<compile_context>
chip_gen: v5e
topology: v5e:2x2
jax: 0.10.0
libtpu: 0.0.40
codegen_flags: <defaults>
</compile_context>

<pallas_src>
import jax
import jax.numpy as jnp
from jax.experimental import pallas as pl
from jax.experimental.pallas import tpu as pltpu


def bn_add_conv1x1_kernel(ss_ref, x_ref, r_ref, w_ref, o_ref):
    # ss_ref : (Cin, 2)   col 0 = gamma/sqrt(var+eps), col 1 = beta - mean*scale
    # x_ref  : (Cin, M)   activation (channel-major)
    # r_ref  : (Cin, M)   residual
    # w_ref  : (CB,  Cin) block of the 1x1 conv weight
    # o_ref  : (CB,  M)   output block
    scale = ss_ref[:, 0:1]
    shift = ss_ref[:, 1:2]
    # Elementwise BN + residual add (trivial VPU work, hidden under MXU/DMA;
    # recomputed per grid step, which is safe under "parallel" sharding).
    y = x_ref[...] * scale + shift + r_ref[...]
    o_ref[...] = jnp.dot(
        w_ref[...], y, preferred_element_type=jnp.float32
    ).astype(o_ref.dtype)


def _num_output_blocks():
    # One block per TensorCore: v7x has 2 TCs/chip, v5e/v6e have 1.
    try:
        kind = jax.devices()[0].device_kind.lower()
    except Exception:
        kind = ""
    return 2 if "v7" in kind else 1


def bn_add_conv1x1(x157, x149, gamma, beta, running_mean, running_var, weight,
                   eps=1e-3):
    """x157, x149: (1, C, H, W) float32; weight: (Cout, C, 1, 1) float32."""
    N, C, H, W = x157.shape
    assert N == 1, "channel-major free-reshape path assumes N == 1"
    Cout = weight.shape[0]
    M = H * W

    # Free reshapes (no data movement) — NCHW with N=1 is already (C, H*W).
    x2d = x157.reshape(C, M)
    r2d = x149.reshape(C, M)
    w2d = weight.reshape(Cout, C)            # OIHW, 1x1 -> (Cout, Cin), free

    # Fold BN params; reuse `scale` when building `shift`; merge into (C, 2).
    scale = gamma * jax.lax.rsqrt(running_var + eps)
    shift = beta - running_mean * scale
    ss = jnp.stack([scale, shift], axis=1)   # (C, 2)

    # Minimal grid: one output block per TensorCore (2 on v7x, 1 elsewhere).
    nblocks = _num_output_blocks()
    if Cout % (8 * nblocks) != 0:
        nblocks = 1
    CB = Cout // nblocks                     # 336 (v7x) or 672 — multiples of 8
    assert Cout % CB == 0 and CB % 8 == 0

    cost = pl.CostEstimate(
        flops=2 * Cout * C * M,
        bytes_accessed=(2 * C * M + C * 2 + Cout * C + Cout * M) * 4,
        transcendentals=0,
    )

    out2d = pl.pallas_call(
        bn_add_conv1x1_kernel,
        out_shape=jax.ShapeDtypeStruct((Cout, M), jnp.float32),
        grid=(Cout // CB,),
        in_specs=[
            pl.BlockSpec((C, 2), lambda i: (0, 0)),     # scale/shift (resident)
            pl.BlockSpec((C, M), lambda i: (0, 0)),     # x           (resident)
            pl.BlockSpec((C, M), lambda i: (0, 0)),     # residual    (resident)
            pl.BlockSpec((CB, C), lambda i: (i, 0)),    # weight block
        ],
        out_specs=pl.BlockSpec((CB, M), lambda i: (i, 0)),
        compiler_params=pltpu.CompilerParams(
            dimension_semantics=("parallel",),
        ),
        cost_estimate=cost,
    )(ss, x2d, r2d, w2d)

    # Free reshape back to NCHW.
    return out2d.reshape(1, Cout, H, W)


def reference(x157, x149, gamma, beta, running_mean, running_var, weight,
              eps=1e-3):
    # Pure-JAX reference (eval-mode BN + add + 1x1 conv), NCHW.
    scale = gamma / jnp.sqrt(running_var + eps)
    shift = beta - running_mean * scale
    y = x157 * scale[None, :, None, None] + shift[None, :, None, None] + x149
    return jax.lax.conv_general_dilated(
        y, weight, window_strides=(1, 1), padding="VALID",
        dimension_numbers=("NCHW", "OIHW", "NCHW"),
    )


if __name__ == "__main__":
    # Shapes implied by the module: (1, 112, 14, 14) inputs, 1x1 conv 112->672.
    N, C, H, W, Cout = 1, 112, 14, 14, 672
    key = jax.random.PRNGKey(0)
    k1, k2, k3, k4, k5, k6, k7 = jax.random.split(key, 7)

    x157 = jax.random.normal(k1, (N, C, H, W), jnp.float32)
    x149 = jax.random.normal(k2, (N, C, H, W), jnp.float32)

    # Deterministic synthetic parameters.
    # TODO(synk): training-mode BN (batch statistics) not implemented; using
    #             running-stat (inference) semantics as in module.eval().
    gamma = 1.0 + 0.1 * jax.random.normal(k3, (C,), jnp.float32)
    beta = 0.1 * jax.random.normal(k4, (C,), jnp.float32)
    running_mean = 0.05 * jax.random.normal(k5, (C,), jnp.float32)
    running_var = 1.0 + 0.1 * jax.random.uniform(k6, (C,), jnp.float32)
    conv_w = 0.05 * jax.random.normal(k7, (Cout, C, 1, 1), jnp.float32)

    out = bn_add_conv1x1(x157, x149, gamma, beta, running_mean, running_var,
                         conv_w, eps=1e-3)
    out = jax.block_until_ready(out)

    ref = jax.block_until_ready(
        reference(x157, x149, gamma, beta, running_mean, running_var, conv_w,
                  eps=1e-3)
    )

    assert out.shape == (N, Cout, H, W), out.shape
    assert jnp.allclose(out, ref, atol=1e-3, rtol=1e-3), float(
        jnp.max(jnp.abs(out - ref))
    )
    print("KERNEL_OK")
</pallas_src>

<mosaic_0001>
module attributes {stable_mosaic.version = 11 : i64} {
  func.func @bn_add_conv1x1_kernel(%arg0: i32, %arg1: memref<112x2xf32, #tpu.memory_space<vmem>>, %arg2: memref<112x196xf32, #tpu.memory_space<vmem>>, %arg3: memref<112x196xf32, #tpu.memory_space<vmem>>, %arg4: memref<672x112xf32, #tpu.memory_space<vmem>>, %arg5: memref<672x196xf32, #tpu.memory_space<vmem>>) attributes {dimension_semantics = [#tpu.dimension_semantics<parallel>], iteration_bounds = array<i64: 1>, scalar_prefetch = 0 : i64, scratch_operands = 0 : i64, tpu.core_type = #tpu.core_type<tc>, window_params = [{pipeline_mode = #tpu.pipeline_mode<synchronous>, transform_indices = @transform_0, window_bounds = array<i64: 112, 2>}, {pipeline_mode = #tpu.pipeline_mode<synchronous>, transform_indices = @transform_1, window_bounds = array<i64: 112, 196>}, {pipeline_mode = #tpu.pipeline_mode<synchronous>, transform_indices = @transform_2, window_bounds = array<i64: 112, 196>}, {transform_indices = @transform_3, window_bounds = array<i64: 672, 112>}, {transform_indices = @transform_4, window_bounds = array<i64: 672, 196>}]} {
    %c0 = arith.constant 0 : index
    %c0_0 = arith.constant 0 : index
    %0 = vector.load %arg1[%c0, %c0_0] : memref<112x2xf32, #tpu.memory_space<vmem>>, vector<112x1xf32>
    %c0_1 = arith.constant 0 : index
    %c1 = arith.constant 1 : index
    %1 = vector.load %arg1[%c0_1, %c1] : memref<112x2xf32, #tpu.memory_space<vmem>>, vector<112x1xf32>
    %c0_2 = arith.constant 0 : index
    %c0_3 = arith.constant 0 : index
    %2 = vector.load %arg2[%c0_2, %c0_3] : memref<112x196xf32, #tpu.memory_space<vmem>>, vector<112x196xf32>
    %3 = vector.broadcast %0 : vector<112x1xf32> to vector<112x196xf32>
    %4 = arith.mulf %2, %3 : vector<112x196xf32>
    %5 = vector.broadcast %1 : vector<112x1xf32> to vector<112x196xf32>
    %6 = arith.addf %4, %5 : vector<112x196xf32>
    %c0_4 = arith.constant 0 : index
    %c0_5 = arith.constant 0 : index
    %7 = vector.load %arg3[%c0_4, %c0_5] : memref<112x196xf32, #tpu.memory_space<vmem>>, vector<112x196xf32>
    %8 = arith.addf %6, %7 : vector<112x196xf32>
    %c0_6 = arith.constant 0 : index
    %c0_7 = arith.constant 0 : index
    %9 = vector.load %arg4[%c0_6, %c0_7] : memref<672x112xf32, #tpu.memory_space<vmem>>, vector<672x112xf32>
    %cst = arith.constant dense<0.000000e+00> : vector<672x196xf32>
    %10 = tpu.matmul %9, %8, %cst {dimension_numbers = #tpu.dot_dimension_numbers<[1], [0], [0], [1], [0, 0, 1, 1], [], []>} : vector<672x112xf32>, vector<112x196xf32>, vector<672x196xf32> -> vector<672x196xf32>
    %c0_8 = arith.constant 0 : index
    %c0_9 = arith.constant 0 : index
    %11 = vector.load %arg5[%c0_8, %c0_9] : memref<672x196xf32, #tpu.memory_space<vmem>>, vector<672x196xf32>
    tpu.vector_store %arg5[%c0_8, %c0_9], %10 {strides = array<i32>} : memref<672x196xf32, #tpu.memory_space<vmem>>, vector<672x196xf32>,
    return
  }
  func.func @transform_0(%arg0: i32) -> (i32, i32) {
    %c0_i32 = arith.constant 0 : i32
    %c0_i32_0 = arith.constant 0 : i32
    %c0_i32_1 = arith.constant 0 : i32
    return %c0_i32, %c0_i32_0 : i32, i32
  }
  func.func @transform_1(%arg0: i32) -> (i32, i32) {
    %c0_i32 = arith.constant 0 : i32
    %c0_i32_0 = arith.constant 0 : i32
    %c0_i32_1 = arith.constant 0 : i32
    return %c0_i32, %c0_i32_0 : i32, i32
  }
  func.func @transform_2(%arg0: i32) -> (i32, i32) {
    %c0_i32 = arith.constant 0 : i32
    %c0_i32_0 = arith.constant 0 : i32
    %c0_i32_1 = arith.constant 0 : i32
    return %c0_i32, %c0_i32_0 : i32, i32
  }
  func.func @transform_3(%arg0: i32) -> (i32, i32) {
    %c0_i32 = arith.constant 0 : i32
    %c0_i32_0 = arith.constant 0 : i32
    return %arg0, %c0_i32 : i32, i32
  }
  func.func @transform_4(%arg0: i32) -> (i32, i32) {
    %c0_i32 = arith.constant 0 : i32
    %c0_i32_0 = arith.constant 0 : i32
    return %arg0, %c0_i32 : i32, i32
  }
}

</mosaic_0001>

<bundles_post_ra>
// kernel: tpu_custom_call.1
= control target key start
LH: loop header
LB: loop body
LE: loop exit
PB: predicated region body
PF: predicated region fallthrough
CT: control target
= control target key end

     0   :  { %v1557_v0 = vmov 1   ;;  %v1558_v5 = vmov 0   ;;  %vm381_vm0 = vcmask 916480   ;;  %vm1173_vm1 = vcmask 556032   ;;  %s2810_s0 = inlined_call_operand.vmem [shape: f32[112,2], index: 0, kind: input, shape index: {}]   ;;  %s2811_s1 = inlined_call_operand.vmem [shape: f32[112,196], index: 1, kind: input, shape index: {}]   ;;  %s2812_s2 = inlined_call_operand.vmem [shape: f32[112,196], index: 2, kind: input, shape index: {}]   ;;  %s2813_s3 = inlined_call_operand.vmem [shape: f32[672,112], index: 3, kind: input, shape index: {}]   ;;  %s2814_s4 = inlined_call_operand.vmem [shape: f32[672,196], index: 4, kind: output, shape index: {}]  }
   0x1   :  { %1547 = vset.pattern.permute.xlu0 %v1557_v0  ;;  %1543 = vset.pattern.permute.xlu1 %v1557_v0  ;;  %v30_v1 = vld [vmem:[%s2810_s0 + $0x68] sm:$0xff]  ;;  %v28_v2 = vld [vmem:[%s2810_s0 + $0x58] sm:$0xff]  ;;  %v29_v3 = vld [vmem:[%s2810_s0 + $0x60] sm:$0xff] }
   0x2   :  { %210 = vperm.xlu1 %1543, %v30_v1   ;;  %202 = vperm.xlu0 %1547, %v28_v2   ;;  %v23_v4 = vld [vmem:[%s2810_s0 + $0x30] sm:$0xff]  ;;  %v26_v7 = vld [vmem:[%s2810_s0 + $0x48] sm:$0xff]  ;;  %v25_v8 = vld [vmem:[%s2810_s0 + $0x40] sm:$0xff] }
   0x3   :  { %1545 = vset.pattern.permute.xlu2 %v1557_v0  ;;  %v27_v6 = vld [vmem:[%s2810_s0 + $0x50] sm:$0xff]  ;;  %v24_v9 = vld [vmem:[%s2810_s0 + $0x38] sm:$0xff]  ;;  %v22_v11 = vld [vmem:[%s2810_s0 + $0x28] sm:$0xff] }
   0x4   :  { %206 = vperm.xlu2 %1545, %v29_v3   ;;  %v19_v10 = vld [vmem:[%s2810_s0 + $0x10] sm:$0xff]  ;;  %v18_v12 = vld [vmem:[%s2810_s0 + $0x8] sm:$0xff]  ;;  %v21_v13 = vld [vmem:[%s2810_s0 + $0x20] sm:$0xff] }
   0x5   :  { %v20_v14 = vld [vmem:[%s2810_s0 + $0x18] sm:$0xff]  ;;  %v17_v15 = vld [vmem:[%s2810_s0] sm:$0xff]  ;;  %v57_v24 = vld [vmem:[%s2811_s1 + $0xd0] sm:$0xff] }
   0x6   :  { %v58_v25 = vld [vmem:[%s2811_s1 + $0xd8] sm:$0xff]  ;;  %v267_v30 = vld [vmem:[%s2812_s2 + $0xd0] sm:$0xff]  ;;  %v51_v39 = vld [vmem:[%s2811_s1 + $0xa0] sm:$0xff] }
   0x7   :  { %v268_v31 = vld [vmem:[%s2812_s2 + $0xd8] sm:$0xff]  ;;  %v53_v32 = vld [vmem:[%s2811_s1 + $0xb0] sm:$0xff]  ;;  %v55_v41 = vld [vmem:[%s2811_s1 + $0xc0] sm:$0xff] }
   0x8   :  { %v54_v35 = vld [vmem:[%s2811_s1 + $0xb8] sm:$0xff]  ;;  %v56_v42 = vld [vmem:[%s2811_s1 + $0xc8] sm:$0xff]  ;;  %v49_v45 = vld [vmem:[%s2811_s1 + $0x90] sm:$0xff] }
   0x9   :  { %v52_v43 = vld [vmem:[%s2811_s1 + $0xa8] sm:$0xff]  ;;  %v50_v49 = vld [vmem:[%s2811_s1 + $0x98] sm:$0xff]  ;;  %v265_v53 = vld [vmem:[%s2812_s2 + $0xc0] sm:$0xff] }
   0xa   :  { %1544 = vset.pattern.permute.xlu1 %v1558_v5  ;;  %182 = vperm.xlu0 %1547, %v23_v4   ;;  %v266_v54 = vld [vmem:[%s2812_s2 + $0xc8] sm:$0xff]  ;;  %v263_v61 = vld [vmem:[%s2812_s2 + $0xb0] sm:$0xff]  ;;  %v264_v62 = vld [vmem:[%s2812_s2 + $0xb8] sm:$0xff] }
   0xb   :  { %116 = vperm.xlu1 %1544, %v28_v2  }
   0xc   :  { %1546 = vset.pattern.permute.xlu2 %v1558_v5 }
   0xd   :  { %111 = vperm.xlu2 %1546, %v27_v6  }
  0x12   :  { %1551 = vset.pattern.permute.xlu0 %v1558_v5 }
  0x13   :  { %106 = vperm.xlu1 %1544, %v26_v7   ;;  %126 = vperm.xlu0 %1551, %v30_v1   ;;  %v48_v1 = vld [vmem:[%s2811_s1 + $0x88] sm:$0xff] }
  0x15   :  { %1548 = vset.pattern.permute.xlu2 %v1557_v0 }
  0x16   :  { %198 = vperm.xlu2 %1548, %v27_v6  }
  0x1b   :  { %101 = vperm.xlu1 %1544, %v25_v8   ;;  %121 = vperm.xlu0 %1551, %v29_v3  }
  0x1e   :  { %194 = vperm.xlu2 %1548, %v26_v7  }
  0x23   :  { %1549 = vset.pattern.permute.xlu1 %v1557_v0  ;;  %96 = vperm.xlu0 %1551, %v24_v9  }
  0x24   :  { %190 = vperm.xlu1 %1549, %v25_v8  }
  0x26   :  { %1550 = vset.pattern.permute.xlu2 %v1558_v5 }
  0x27   :  { %91 = vperm.xlu2 %1550, %v23_v4  }
  0x2b   :  { %71 = vperm.xlu0 %1551, %v19_v10  }
  0x2c   :  { %186 = vperm.xlu1 %1549, %v24_v9  }
  0x2f   :  { %86 = vperm.xlu2 %1550, %v22_v11  }
  0x33   :  { %1556 = vset.pattern.permute.xlu0 %v1557_v0 }
  0x34   :  { %1552 = vset.pattern.permute.xlu1 %v1558_v5  ;;  %162 = vperm.xlu0 %1556, %v18_v12  }
  0x35   :  { %81 = vperm.xlu1 %1552, %v21_v13  }
  0x37   :  { %1553 = vset.pattern.permute.xlu2 %v1557_v0 }
  0x38   :  { %178 = vperm.xlu2 %1553, %v22_v11  }
  0x3d   :  { %76 = vperm.xlu1 %1552, %v20_v14  }
  0x40   :  { %174 = vperm.xlu2 %1553, %v21_v13  }
  0x45   :  { %1554 = vset.pattern.permute.xlu1 %v1557_v0  ;;  %v47_v0 = vld [vmem:[%s2811_s1 + $0x80] sm:$0xff] }
  0x46   :  { %170 = vperm.xlu1 %1554, %v20_v14   ;;  %v259_v14 = vld [vmem:[%s2812_s2 + $0x90] sm:$0xff] }
  0x48   :  { %1555 = vset.pattern.permute.xlu2 %v1558_v5  ;;  %v261_v5 = vld [vmem:[%s2812_s2 + $0xa0] sm:$0xff] }
  0x49   :  { %66 = vperm.xlu2 %1555, %v18_v12  }
  0x4e   :  { %166 = vperm.xlu1 %1554, %v19_v10   ;;  %v262_v10 = vld [vmem:[%s2812_s2 + $0xa8] sm:$0xff] }
  0x51   :  { %61 = vperm.xlu2 %1555, %v17_v15  }
  0x56   :  { %158 = vperm.xlu1 %1554, %v17_v15  }
  0x5e   :  { %v207_v16 = vpop.permute.xlu2 %206 }
  0x67   :  { %v112_v17 = vpop.permute.xlu2 %111 }
  0x68   :  { %v149_v48 = vmul.f32 %v112_v17, %v51_v39  ;;  %v150_v52 = vmul.f32 %v112_v17, %v52_v43  ;;  %v260_v17 = vld [vmem:[%s2812_s2 + $0x98] sm:$0xff] }
  0x70   :  { %v199_v20 = vpop.permute.xlu2 %198 }
  0x71   :  { %v233_v63 = vadd.f32 %v199_v20, %v149_v48  ;;  %v234_v4 = vadd.f32 %v199_v20, %v150_v52  ;;  %v253_v48 = vld [vmem:[%s2812_s2 + $0x60] sm:$0xff] }
  0x74   :  { %v211_v18 = vpop.permute.xlu1 %210  ;;  %v203_v19 = vpop.permute.xlu0 %202 }
  0x78   :  { %v195_v23 = vpop.permute.xlu2 %194 }
  0x7c   :  { %v1626_v21 = vpop.permute.xlu0 %182 }
  0x7d   :  { %v117_v22 = vpop.permute.xlu1 %116 }
  0x7e   :  { %v151_v40 = vmul.f32 %v117_v22, %v53_v32  ;;  %v152_v44 = vmul.f32 %v117_v22, %v54_v35  ;;  %v42_v35 = vld [vmem:[%s2811_s1 + $0x58] sm:$0xff] }
  0x80   :  { %v235_v55 = vadd.f32 %v203_v19, %v151_v40  ;;  %v236_v59 = vadd.f32 %v203_v19, %v152_v44  ;;  %v258_v19 = vld [vmem:[%s2812_s2 + $0x88] sm:$0xff]  ;;  %v255_v44 = vld [vmem:[%s2812_s2 + $0x70] sm:$0xff] }
  0x81   :  { %v1646_v38 = vpop.permute.xlu2 %91 }
  0x82   :  { %v291_v7 = vadd.f32 %v263_v61, %v235_v55  ;;  %v292_v8 = vadd.f32 %v264_v62, %v236_v59  ;;  %v251_v55 = vld [vmem:[%s2812_s2 + $0x50] sm:$0xff]  ;;  %v39_v59 = vld [vmem:[%s2811_s1 + $0x40] sm:$0xff] }
  0x85   :  { %v107_v26 = vpop.permute.xlu1 %106  ;;  %v127_v27 = vpop.permute.xlu0 %126 }
  0x86   :  { %v155_v28 = vmul.f32 %v127_v27, %v57_v24  ;;  %v156_v29 = vmul.f32 %v127_v27, %v58_v25  ;;  %v147_v56 = vmul.f32 %v107_v26, %v49_v45  ;;  %v148_v60 = vmul.f32 %v107_v26, %v50_v49  ;;  %v43_v24 = vld [vmem:[%s2811_s1 + $0x60] sm:$0xff]  ;;  %v45_v26 = vld [vmem:[%s2811_s1 + $0x70] sm:$0xff]  ;;  %v46_v27 = vld [vmem:[%s2811_s1 + $0x78] sm:$0xff] }
  0x87   :  { %v256_v45 = vld [vmem:[%s2812_s2 + $0x78] sm:$0xff] }
  0x88   :  { %v239_v33 = vadd.f32 %v211_v18, %v155_v28  ;;  %v240_v34 = vadd.f32 %v211_v18, %v156_v29  ;;  %v231_v6 = vadd.f32 %v195_v23, %v147_v56  ;;  %v232_v11 = vadd.f32 %v195_v23, %v148_v60  ;;  %v257_v18 = vld [vmem:[%s2812_s2 + $0x80] sm:$0xff]  ;;  %v44_v29 = vld [vmem:[%s2811_s1 + $0x68] sm:$0xff] }
  0x89   :  { %v87_v9 = vpop.permute.xlu2 %86  ;;  %v290_v23 = vadd.f32 %v262_v10, %v234_v4  ;;  %v142_v39 = vmul.f32 %v1646_v38, %v44_v29  ;;  %v40_v60 = vld [vmem:[%s2811_s1 + $0x48] sm:$0xff]  ;;  %v38_v10 = vld [vmem:[%s2811_s1 + $0x38] sm:$0xff] }
  0x8a   :  { %v295_v36 = vadd.f32 %v267_v30, %v239_v33  ;;  %v296_v37 = vadd.f32 %v268_v31, %v240_v34  ;;  %v287_v25 = vadd.f32 %v259_v14, %v231_v6  ;;  %v288_v30 = vadd.f32 %v260_v17, %v232_v11  ;;  %v41_v33 = vld [vmem:[%s2811_s1 + $0x50] sm:$0xff] }
  0x8b   :  { %v141_v34 = vmul.f32 %v1646_v38, %v43_v24  ;;  %v139_v40 = vmul.f32 %v87_v9, %v41_v33  ;;  %v226_v49 = vadd.f32 %v1626_v21, %v142_v39  ;;  %v245_v33 = vld [vmem:[%s2812_s2 + $0x20] sm:$0xff] }
  0x8c   :  { %636 = vmatpush.msra.mxu0 %v295_v36  ;;  %1513 = vmatpush.msra.mxu2 %v295_v36 }
  0x8d   :  { %905 = vmatpush.msra.mxu1 %v296_v37  ;;  %1527 = vmatpush.msra.mxu3 %v296_v37  ;;  %v102_v46 = vpop.permute.xlu1 %101  ;;  %v122_v47 = vpop.permute.xlu0 %121  ;;  %v225_v38 = vadd.f32 %v1626_v21, %v141_v34  ;;  %v246_v34 = vld [vmem:[%s2812_s2 + $0x28] sm:$0xff] }
  0x8e   :  { %v153_v50 = vmul.f32 %v122_v47, %v55_v41  ;;  %v154_v51 = vmul.f32 %v122_v47, %v56_v42  ;;  %v145_v12 = vmul.f32 %v102_v46, %v47_v0  ;;  %v146_v13 = vmul.f32 %v102_v46, %v48_v1 }
  0x8f   :  { %v140_v41 = vmul.f32 %v87_v9, %v42_v35  ;;  %v281_v56 = vadd.f32 %v253_v48, %v225_v38  ;;  %v37_v9 = vld [vmem:[%s2811_s1 + $0x30] sm:$0xff] }
  0x90   :  { %v237_v57 = vadd.f32 %v207_v16, %v153_v50  ;;  %v238_v58 = vadd.f32 %v207_v16, %v154_v51  ;;  %v289_v16 = vadd.f32 %v261_v5, %v233_v63 }
  0x92   :  { %v293_v2 = vadd.f32 %v265_v53, %v237_v57  ;;  %v294_v3 = vadd.f32 %v266_v54, %v238_v58  ;;  %v179_v43 = vpop.permute.xlu2 %178  ;;  %v254_v53 = vld [vmem:[%s2812_s2 + $0x68] sm:$0xff]  ;;  %v252_v57 = vld [vmem:[%s2812_s2 + $0x58] sm:$0xff] }
  0x93   :  { %v223_v50 = vadd.f32 %v179_v43, %v139_v40  ;;  %v224_v54 = vadd.f32 %v179_v43, %v140_v41  ;;  %v282_v21 = vadd.f32 %v254_v53, %v226_v49  ;;  %v243_v40 = vld [vmem:[%s2812_s2 + $0x10] sm:$0xff]  ;;  %v244_v43 = vld [vmem:[%s2812_s2 + $0x18] sm:$0xff] }
  0x94   :  { %637 = vmatpush.msra.mxu0 %v293_v2  ;;  %1514 = vmatpush.msra.mxu2 %v293_v2  ;;  %v249_v2 = vld [vmem:[%s2812_s2 + $0x40] sm:$0xff] }
  0x95   :  { %906 = vmatpush.msra.mxu1 %v294_v3  ;;  %1528 = vmatpush.msra.mxu3 %v294_v3  ;;  %v97_v28 = vpop.permute.xlu0 %96  ;;  %v279_v58 = vadd.f32 %v251_v55, %v223_v50  ;;  %v280_v61 = vadd.f32 %v252_v57, %v224_v54  ;;  %v250_v3 = vld [vmem:[%s2812_s2 + $0x48] sm:$0xff]  ;;  %v339_v57 = vld [vmem:[%s2813_s3 + $0x150] sm:$0xff] }
  0x96   :  { %v191_v15 = vpop.permute.xlu1 %190  ;;  %638 = vmatpush.msra.mxu0 %v291_v7  ;;  %1515 = vmatpush.msra.mxu2 %v291_v7  ;;  %v143_v36 = vmul.f32 %v97_v28, %v45_v26  ;;  %v144_v37 = vmul.f32 %v97_v28, %v46_v27  ;;  %v36_v26 = vld [vmem:[%s2811_s1 + $0x28] sm:$0xff] }
  0x97   :  { %v229_v20 = vadd.f32 %v191_v15, %v145_v12  ;;  %v230_v22 = vadd.f32 %v191_v15, %v146_v13  ;;  %907 = vmatpush.msra.mxu1 %v292_v8  ;;  %1529 = vmatpush.msra.mxu3 %v292_v8  ;;  %v247_v15 = vld [vmem:[%s2812_s2 + $0x30] sm:$0xff] }
  0x98   :  { %639 = vmatpush.msra.mxu0 %v289_v16  ;;  %1516 = vmatpush.msra.mxu2 %v289_v16  ;;  %v248_v16 = vld [vmem:[%s2812_s2 + $0x38] sm:$0xff] }
  0x99   :  { %908 = vmatpush.msra.mxu1 %v290_v23  ;;  %1530 = vmatpush.msra.mxu3 %v290_v23  ;;  %v285_v31 = vadd.f32 %v257_v18, %v229_v20  ;;  %v286_v32 = vadd.f32 %v258_v19, %v230_v22  ;;  %v33_v19 = vld [vmem:[%s2811_s1 + $0x10] sm:$0xff]  ;;  %v34_v22 = vld [vmem:[%s2811_s1 + $0x18] sm:$0xff] }
  0x9a   :  { %640 = vmatpush.msra.mxu0 %v287_v25  ;;  %1517 = vmatpush.msra.mxu2 %v287_v25  ;;  %v175_v63 = vpop.permute.xlu2 %174  ;;  %v35_v25 = vld [vmem:[%s2811_s1 + $0x20] sm:$0xff] }
  0x9b   :  { %909 = vmatpush.msra.mxu1 %v288_v30  ;;  %1531 = vmatpush.msra.mxu3 %v288_v30 }
  0x9c   :  { %641 = vmatpush.msra.mxu0 %v285_v31  ;;  %1518 = vmatpush.msra.mxu2 %v285_v31 }
  0x9d   :  { %910 = vmatpush.msra.mxu1 %v286_v32  ;;  %1532 = vmatpush.msra.mxu3 %v286_v32  ;;  %v72_v11 = vpop.permute.xlu0 %71 }
  0x9e   :  { %v187_v42 = vpop.permute.xlu1 %186  ;;  %v133_v30 = vmul.f32 %v72_v11, %v35_v25  ;;  %v134_v31 = vmul.f32 %v72_v11, %v36_v26  ;;  %v306_v11 = vld [vmem:[%s2813_s3 + $0x48] sm:$0xff]  ;;  %v355_v25 = vld [vmem:[%s2813_s3 + $0x1d0] sm:$0xff] }
  0x9f   :  { %v227_v46 = vadd.f32 %v187_v42, %v143_v36  ;;  %v228_v47 = vadd.f32 %v187_v42, %v144_v37 }
  0xa1   :  { %v283_v51 = vadd.f32 %v255_v44, %v227_v46  ;;  %v284_v52 = vadd.f32 %v256_v45, %v228_v47  ;;  %v31_v44 = vld [vmem:[%s2811_s1] sm:$0xff]  ;;  %v32_v45 = vld [vmem:[%s2811_s1 + $0x8] sm:$0xff] }
  0xa3   :  { %642 = vmatpush.msra.mxu0 %v283_v51  ;;  %1519 = vmatpush.msra.mxu2 %v283_v51  ;;  %v67_v20 = vpop.permute.xlu2 %66  ;;  %v241_v51 = vld [vmem:[%s2812_s2] sm:$0xff] }
  0xa4   :  { %911 = vmatpush.msra.mxu1 %v284_v52  ;;  %1533 = vmatpush.msra.mxu3 %v284_v52  ;;  %v131_v27 = vmul.f32 %v67_v20, %v33_v19  ;;  %v132_v28 = vmul.f32 %v67_v20, %v34_v22  ;;  %v242_v52 = vld [vmem:[%s2812_s2 + $0x8] sm:$0xff]  ;;  %v353_v20 = vld [vmem:[%s2813_s3 + $0x1c0] sm:$0xff]  ;;  %v311_v22 = vld [vmem:[%s2813_s3 + $0x70] sm:$0xff] }
  0xa5   :  { %643 = vmatpush.msra.mxu0 %v281_v56  ;;  %1520 = vmatpush.msra.mxu2 %v281_v56  ;;  %v310_v19 = vld [vmem:[%s2813_s3 + $0x68] sm:$0xff] }
  0xa6   :  { %912 = vmatpush.msra.mxu1 %v282_v21  ;;  %1534 = vmatpush.msra.mxu3 %v282_v21  ;;  %v163_v29 = vpop.permute.xlu0 %162  ;;  %v297_v21 = vld [vmem:[%s2813_s3] sm:$0xff] }
  0xa7   :  { %644 = vmatpush.msra.mxu0 %v279_v58  ;;  %1521 = vmatpush.msra.mxu2 %v279_v58  ;;  %v82_v62 = vpop.permute.xlu1 %81  ;;  %v215_v37 = vadd.f32 %v163_v29, %v131_v27  ;;  %v216_v39 = vadd.f32 %v163_v29, %v132_v28  ;;  %v340_v58 = vld [vmem:[%s2813_s3 + $0x158] sm:$0xff]  ;;  %v313_v28 = vld [vmem:[%s2813_s3 + $0x80] sm:$0xff] }
  0xa8   :  { %913 = vmatpush.msra.mxu1 %v280_v61  ;;  %1535 = vmatpush.msra.mxu3 %v280_v61  ;;  %v137_v0 = vmul.f32 %v82_v62, %v39_v59  ;;  %v138_v1 = vmul.f32 %v82_v62, %v40_v60  ;;  %v298_v59 = vld [vmem:[%s2813_s3 + $0x8] sm:$0xff]  ;;  %v341_v60 = vld [vmem:[%s2813_s3 + $0x160] sm:$0xff]  ;;  %v299_v61 = vld [vmem:[%s2813_s3 + $0x10] sm:$0xff] }
  0xa9   :  { %v271_v47 = vadd.f32 %v243_v40, %v215_v37  ;;  %v272_v38 = vadd.f32 %v244_v43, %v216_v39  ;;  %v342_v62 = vld [vmem:[%s2813_s3 + $0x168] sm:$0xff]  ;;  %v357_v37 = vld [vmem:[%s2813_s3 + $0x1e0] sm:$0xff] }
  0xaa   :  { %v221_v4 = vadd.f32 %v175_v63, %v137_v0  ;;  %v222_v5 = vadd.f32 %v175_v63, %v138_v1  ;;  %v300_v63 = vld [vmem:[%s2813_s3 + $0x18] sm:$0xff]  ;;  %v343_v0 = vld [vmem:[%s2813_s3 + $0x170] sm:$0xff]  ;;  %v301_v1 = vld [vmem:[%s2813_s3 + $0x20] sm:$0xff] }
  0xab   :  { %v62_v46 = vpop.permute.xlu2 %61 }
  0xac   :  { %v277_v6 = vadd.f32 %v249_v2, %v221_v4  ;;  %v278_v7 = vadd.f32 %v250_v3, %v222_v5  ;;  %v129_v48 = vmul.f32 %v62_v46, %v31_v44  ;;  %v130_v49 = vmul.f32 %v62_v46, %v32_v45  ;;  %v344_v2 = vld [vmem:[%s2813_s3 + $0x178] sm:$0xff]  ;;  %v302_v3 = vld [vmem:[%s2813_s3 + $0x28] sm:$0xff]  ;;  %v345_v4 = vld [vmem:[%s2813_s3 + $0x180] sm:$0xff] }
  0xad   :  { %v303_v5 = vld [vmem:[%s2813_s3 + $0x30] sm:$0xff]  ;;  %v358_v44 = vld [vmem:[%s2813_s3 + $0x1e8] sm:$0xff] }
  0xae   :  { %645 = vmatpush.msra.mxu0 %v277_v6  ;;  %1522 = vmatpush.msra.mxu2 %v277_v6  ;;  %v346_v6 = vld [vmem:[%s2813_s3 + $0x188] sm:$0xff] }
  0xaf   :  { %914 = vmatpush.msra.mxu1 %v278_v7  ;;  %1536 = vmatpush.msra.mxu3 %v278_v7  ;;  %v77_v8 = vpop.permute.xlu1 %76  ;;  %v304_v7 = vld [vmem:[%s2813_s3 + $0x38] sm:$0xff] }
  0xb0   :  { %v135_v12 = vmul.f32 %v77_v8, %v37_v9  ;;  %v136_v13 = vmul.f32 %v77_v8, %v38_v10  ;;  %v347_v8 = vld [vmem:[%s2813_s3 + $0x190] sm:$0xff]  ;;  %v305_v9 = vld [vmem:[%s2813_s3 + $0x40] sm:$0xff]  ;;  %v348_v10 = vld [vmem:[%s2813_s3 + $0x198] sm:$0xff] }
  0xb8   :  { %v171_v14 = vpop.permute.xlu1 %170 }
  0xb9   :  { %v219_v17 = vadd.f32 %v171_v14, %v135_v12  ;;  %v220_v18 = vadd.f32 %v171_v14, %v136_v13  ;;  %v349_v12 = vld [vmem:[%s2813_s3 + $0x1a0] sm:$0xff]  ;;  %v307_v13 = vld [vmem:[%s2813_s3 + $0x50] sm:$0xff]  ;;  %v350_v14 = vld [vmem:[%s2813_s3 + $0x1a8] sm:$0xff] }
  0xbb   :  { %v275_v23 = vadd.f32 %v247_v15, %v219_v17  ;;  %v276_v24 = vadd.f32 %v248_v16, %v220_v18  ;;  %v308_v15 = vld [vmem:[%s2813_s3 + $0x58] sm:$0xff]  ;;  %v351_v16 = vld [vmem:[%s2813_s3 + $0x1b0] sm:$0xff]  ;;  %v309_v17 = vld [vmem:[%s2813_s3 + $0x60] sm:$0xff] }
  0xbc   :  { %v352_v18 = vld [vmem:[%s2813_s3 + $0x1b8] sm:$0xff] }
  0xbd   :  { %646 = vmatpush.msra.mxu0 %v275_v23  ;;  %1523 = vmatpush.msra.mxu2 %v275_v23  ;;  %v354_v23 = vld [vmem:[%s2813_s3 + $0x1c8] sm:$0xff] }
  0xbe   :  { %915 = vmatpush.msra.mxu1 %v276_v24  ;;  %1537 = vmatpush.msra.mxu3 %v276_v24  ;;  %v312_v24 = vld [vmem:[%s2813_s3 + $0x78] sm:$0xff] }
  0xc0   :  { %v167_v32 = vpop.permute.xlu1 %166 }
  0xc1   :  { %v217_v35 = vadd.f32 %v167_v32, %v133_v30  ;;  %v218_v36 = vadd.f32 %v167_v32, %v134_v31  ;;  %v356_v31 = vld [vmem:[%s2813_s3 + $0x1d8] sm:$0xff] }
  0xc3   :  { %v273_v41 = vadd.f32 %v245_v33, %v217_v35  ;;  %v274_v42 = vadd.f32 %v246_v34, %v218_v36  ;;  %v314_v34 = vld [vmem:[%s2813_s3 + $0x88] sm:$0xff] }
  0xc5   :  { %647 = vmatpush.msra.mxu0 %v273_v41  ;;  %1524 = vmatpush.msra.mxu2 %v273_v41  ;;  %v315_v41 = vld [vmem:[%s2813_s3 + $0x90] sm:$0xff] }
  0xc6   :  { %916 = vmatpush.msra.mxu1 %v274_v42  ;;  %1538 = vmatpush.msra.mxu3 %v274_v42 }
  0xc7   :  { %648 = vmatpush.msra.mxu0 %v271_v47  ;;  %1525 = vmatpush.msra.mxu2 %v271_v47  ;;  %v316_v47 = vld [vmem:[%s2813_s3 + $0x98] sm:$0xff] }
  0xc8   :  { %917 = vmatpush.msra.mxu1 %v272_v38  ;;  %1539 = vmatpush.msra.mxu3 %v272_v38  ;;  %v159_v50 = vpop.permute.xlu1 %158 }
  0xc9   :  { %v213_v53 = vadd.f32 %v159_v50, %v129_v48  ;;  %v214_v54 = vadd.f32 %v159_v50, %v130_v49  ;;  %v359_v49 = vld [vmem:[%s2813_s3 + $0x1f0] sm:$0xff] }
  0xcb   :  { %v269_v55 = vadd.f32 %v241_v51, %v213_v53  ;;  %v270_v56 = vadd.f32 %v242_v52, %v214_v54  ;;  %v317_v52 = vld [vmem:[%s2813_s3 + $0xa0] sm:$0xff] }
  0xcd   :  { %649 = vmatpush.msra.mxu0 %v269_v55  ;;  %1526 = vmatpush.msra.mxu2 %v269_v55  ;;  %v360_v55 = vld [vmem:[%s2813_s3 + $0x1f8] sm:$0xff] }
  0xce   :  { %918 = vmatpush.msra.mxu1 %v270_v56  ;;  %1540 = vmatpush.msra.mxu3 %v270_v56 }
  0xcf   :  { %1387 = vmatmul.msk.f32.vlgmr.msra.gmra.mxu2 %vm381_vm0, %v339_v57  ;;  %1471 = vmatmul.msk.f32.vlgmr.msra.gmra.mxu3 %vm381_vm0, %v339_v57 }
  0xd0   :  { %1345 = vmatmul.msk.f32.vlgmr.msra.gmra.mxu0 %vm381_vm0, %v297_v21  ;;  %1429 = vmatmul.msk.f32.vlgmr.msra.gmra.mxu1 %vm381_vm0, %v297_v21  ;;  %v318_v21 = vld [vmem:[%s2813_s3 + $0xa8] sm:$0xff] }
  0xd7   :  { %1388 = vmatmul.msk.f32.gmra.mxu2 %vm381_vm0, %v340_v58  ;;  %1472 = vmatmul.msk.f32.gmra.mxu3 %vm381_vm0, %v340_v58 }
  0xd8   :  { %1346 = vmatmul.msk.f32.gmra.mxu0 %vm381_vm0, %v298_v59  ;;  %1430 = vmatmul.msk.f32.gmra.mxu1 %vm381_vm0, %v298_v59 }
  0xdf   :  { %1389 = vmatmul.msk.f32.gmra.mxu2 %vm381_vm0, %v341_v60  ;;  %1473 = vmatmul.msk.f32.gmra.mxu3 %vm381_vm0, %v341_v60  ;;  %v361_v60 = vld [vmem:[%s2813_s3 + $0x200] sm:$0xff] }
  0xe0   :  { %1347 = vmatmul.msk.f32.gmra.mxu0 %vm381_vm0, %v299_v61  ;;  %1431 = vmatmul.msk.f32.gmra.mxu1 %vm381_vm0, %v299_v61 }
  0xe7   :  { %1390 = vmatmul.msk.f32.gmra.mxu2 %vm381_vm0, %v342_v62  ;;  %1474 = vmatmul.msk.f32.gmra.mxu3 %vm381_vm0, %v342_v62 }
  0xe8   :  { %1348 = vmatmul.msk.f32.gmra.mxu0 %vm381_vm0, %v300_v63  ;;  %1432 = vmatmul.msk.f32.gmra.mxu1 %vm381_vm0, %v300_v63  ;;  %v319_v63 = vld [vmem:[%s2813_s3 + $0xb0] sm:$0xff] }
  0xef   :  { %1391 = vmatmul.msk.f32.gmra.mxu2 %vm381_vm0, %v343_v0  ;;  %1475 = vmatmul.msk.f32.gmra.mxu3 %vm381_vm0, %v343_v0 }
  0xf0   :  { %1349 = vmatmul.msk.f32.gmra.mxu0 %vm381_vm0, %v301_v1  ;;  %1433 = vmatmul.msk.f32.gmra.mxu1 %vm381_vm0, %v301_v1 }
  0xf7   :  { %1392 = vmatmul.msk.f32.gmra.mxu2 %vm381_vm0, %v344_v2  ;;  %1476 = vmatmul.msk.f32.gmra.mxu3 %vm381_vm0, %v344_v2  ;;  %v362_v2 = vld [vmem:[%s2813_s3 + $0x208] sm:$0xff] }
  0xf8   :  { %1350 = vmatmul.msk.f32.gmra.mxu0 %vm381_vm0, %v302_v3  ;;  %1434 = vmatmul.msk.f32.gmra.mxu1 %vm381_vm0, %v302_v3 }
  0xff   :  { %1393 = vmatmul.msk.f32.gmra.mxu2 %vm381_vm0, %v345_v4  ;;  %1477 = vmatmul.msk.f32.gmra.mxu3 %vm381_vm0, %v345_v4 }
 0x100   :  { %1351 = vmatmul.msk.f32.gmra.mxu0 %vm381_vm0, %v303_v5  ;;  %1435 = vmatmul.msk.f32.gmra.mxu1 %vm381_vm0, %v303_v5  ;;  %v320_v5 = vld [vmem:[%s2813_s3 + $0xb8] sm:$0xff] }
 0x107   :  { %1394 = vmatmul.msk.f32.gmra.mxu2 %vm381_vm0, %v346_v6  ;;  %1478 = vmatmul.msk.f32.gmra.mxu3 %vm381_vm0, %v346_v6 }
 0x108   :  { %1352 = vmatmul.msk.f32.gmra.mxu0 %vm381_vm0, %v304_v7  ;;  %1436 = vmatmul.msk.f32.gmra.mxu1 %vm381_vm0, %v304_v7 }
 0x10f   :  { %1395 = vmatmul.msk.f32.gmra.mxu2 %vm381_vm0, %v347_v8  ;;  %1479 = vmatmul.msk.f32.gmra.mxu3 %vm381_vm0, %v347_v8  ;;  %v363_v8 = vld [vmem:[%s2813_s3 + $0x210] sm:$0xff] }
 0x110   :  { %1353 = vmatmul.msk.f32.gmra.mxu0 %vm381_vm0, %v305_v9  ;;  %1437 = vmatmul.msk.f32.gmra.mxu1 %vm381_vm0, %v305_v9 }
 0x117   :  { %1396 = vmatmul.msk.f32.gmra.mxu2 %vm381_vm0, %v348_v10  ;;  %1480 = vmatmul.msk.f32.gmra.mxu3 %vm381_vm0, %v348_v10 }
 0x118   :  { %1354 = vmatmul.msk.f32.gmra.mxu0 %vm381_vm0, %v306_v11  ;;  %1438 = vmatmul.msk.f32.gmra.mxu1 %vm381_vm0, %v306_v11  ;;  %v321_v11 = vld [vmem:[%s2813_s3 + $0xc0] sm:$0xff] }
 0x11f   :  { %1397 = vmatmul.msk.f32.gmra.mxu2 %vm381_vm0, %v349_v12  ;;  %1481 = vmatmul.msk.f32.gmra.mxu3 %vm381_vm0, %v349_v12 }
 0x120   :  { %1355 = vmatmul.msk.f32.gmra.mxu0 %vm381_vm0, %v307_v13  ;;  %1439 = vmatmul.msk.f32.gmra.mxu1 %vm381_vm0, %v307_v13 }
 0x127   :  { %1398 = vmatmul.msk.f32.gmra.mxu2 %vm381_vm0, %v350_v14  ;;  %1482 = vmatmul.msk.f32.gmra.mxu3 %vm381_vm0, %v350_v14  ;;  %v364_v14 = vld [vmem:[%s2813_s3 + $0x218] sm:$0xff] }
 0x128   :  { %1356 = vmatmul.msk.f32.gmra.mxu0 %vm381_vm0, %v308_v15  ;;  %1440 = vmatmul.msk.f32.gmra.mxu1 %vm381_vm0, %v308_v15 }
 0x12f   :  { %1399 = vmatmul.msk.f32.gmra.mxu2 %vm381_vm0, %v351_v16  ;;  %1483 = vmatmul.msk.f32.gmra.mxu3 %vm381_vm0, %v351_v16 }
 0x130   :  { %1357 = vmatmul.msk.f32.gmra.mxu0 %vm381_vm0, %v309_v17  ;;  %1441 = vmatmul.msk.f32.gmra.mxu1 %vm381_vm0, %v309_v17  ;;  %v322_v17 = vld [vmem:[%s2813_s3 + $0xc8] sm:$0xff] }
 0x137   :  { %1400 = vmatmul.msk.f32.gmra.mxu2 %vm381_vm0, %v352_v18  ;;  %1484 = vmatmul.msk.f32.gmra.mxu3 %vm381_vm0, %v352_v18 }
 0x138   :  { %1358 = vmatmul.msk.f32.gmra.mxu0 %vm381_vm0, %v310_v19  ;;  %1442 = vmatmul.msk.f32.gmra.mxu1 %vm381_vm0, %v310_v19 }
 0x13f   :  { %1401 = vmatmul.msk.f32.gmra.mxu2 %vm381_vm0, %v353_v20  ;;  %1485 = vmatmul.msk.f32.gmra.mxu3 %vm381_vm0, %v353_v20  ;;  %v365_v20 = vld [vmem:[%s2813_s3 + $0x220] sm:$0xff] }
 0x140   :  { %1359 = vmatmul.msk.f32.gmra.mxu0 %vm381_vm0, %v311_v22  ;;  %1443 = vmatmul.msk.f32.gmra.mxu1 %vm381_vm0, %v311_v22 }
 0x147   :  { %1402 = vmatmul.msk.f32.gmra.mxu2 %vm381_vm0, %v354_v23  ;;  %1486 = vmatmul.msk.f32.gmra.mxu3 %vm381_vm0, %v354_v23 }
 0x148   :  { %1360 = vmatmul.msk.f32.gmra.mxu0 %vm381_vm0, %v312_v24  ;;  %1444 = vmatmul.msk.f32.gmra.mxu1 %vm381_vm0, %v312_v24  ;;  %v323_v24 = vld [vmem:[%s2813_s3 + $0xd0] sm:$0xff] }
 0x14d   :  { %v651_v26 = vpop.f32.mrf.mxu0  ;;  %v920_v27 = vpop.f32.mrf.mxu1 }
 0x14e   :  { %1172 = vst [vmem:[%s2814_s4] sm:$0xff] %v651_v26 }
 0x14f   :  { %1403 = vmatmul.msk.f32.gmra.mxu2 %vm381_vm0, %v355_v25  ;;  %1487 = vmatmul.msk.f32.gmra.mxu3 %vm381_vm0, %v355_v25  ;;  %1174 = vst.msk [vmem:[%s2814_s4 + $0x8] sm:$0xff] %vm1173_vm1, %v920_v27  ;;  %v366_v27 = vld [vmem:[%s2813_s3 + $0x228] sm:$0xff] }
 0x150   :  { %1361 = vmatmul.msk.f32.gmra.mxu0 %vm381_vm0, %v313_v28  ;;  %1445 = vmatmul.msk.f32.gmra.mxu1 %vm381_vm0, %v313_v28 }
 0x152   :  { %v777_v29 = vpop.f32.mrf.mxu2  ;;  %v1046_v30 = vpop.f32.mrf.mxu3 }
 0x153   :  { %1257 = vst [vmem:[%s2814_s4 + $0x2a0] sm:$0xff] %v777_v29 }
 0x154   :  { %1258 = vst.msk [vmem:[%s2814_s4 + $0x2a8] sm:$0xff] %vm1173_vm1, %v1046_v30  ;;  %v324_v30 = vld [vmem:[%s2813_s3 + $0xd8] sm:$0xff] }
 0x155   :  { %v654_v32 = vpop.f32.mrf.mxu0  ;;  %v923_v33 = vpop.f32.mrf.mxu1 }
 0x156   :  { %1175 = vst [vmem:[%s2814_s4 + $0x10] sm:$0xff] %v654_v32 }
 0x157   :  { %1404 = vmatmul.msk.f32.gmra.mxu2 %vm381_vm0, %v356_v31  ;;  %1488 = vmatmul.msk.f32.gmra.mxu3 %vm381_vm0, %v356_v31  ;;  %1176 = vst.msk [vmem:[%s2814_s4 + $0x18] sm:$0xff] %vm1173_vm1, %v923_v33  ;;  %v367_v33 = vld [vmem:[%s2813_s3 + $0x230] sm:$0xff] }
 0x158   :  { %1362 = vmatmul.msk.f32.gmra.mxu0 %vm381_vm0, %v314_v34  ;;  %1446 = vmatmul.msk.f32.gmra.mxu1 %vm381_vm0, %v314_v34 }
 0x15a   :  { %v780_v35 = vpop.f32.mrf.mxu2  ;;  %v1049_v36 = vpop.f32.mrf.mxu3 }
 0x15b   :  { %1259 = vst [vmem:[%s2814_s4 + $0x2b0] sm:$0xff] %v780_v35 }
 0x15c   :  { %1260 = vst.msk [vmem:[%s2814_s4 + $0x2b8] sm:$0xff] %vm1173_vm1, %v1049_v36  ;;  %v325_v36 = vld [vmem:[%s2813_s3 + $0xe0] sm:$0xff] }
 0x15d   :  { %v657_v39 = vpop.f32.mrf.mxu0  ;;  %v926_v40 = vpop.f32.mrf.mxu1 }
 0x15e   :  { %1177 = vst [vmem:[%s2814_s4 + $0x20] sm:$0xff] %v657_v39 }
 0x15f   :  { %1405 = vmatmul.msk.f32.gmra.mxu2 %vm381_vm0, %v357_v37  ;;  %1489 = vmatmul.msk.f32.gmra.mxu3 %vm381_vm0, %v357_v37  ;;  %1178 = vst.msk [vmem:[%s2814_s4 + $0x28] sm:$0xff] %vm1173_vm1, %v926_v40  ;;  %v368_v40 = vld [vmem:[%s2813_s3 + $0x238] sm:$0xff] }
 0x160   :  { %1363 = vmatmul.msk.f32.gmra.mxu0 %vm381_vm0, %v315_v41  ;;  %1447 = vmatmul.msk.f32.gmra.mxu1 %vm381_vm0, %v315_v41 }
 0x162   :  { %v783_v42 = vpop.f32.mrf.mxu2  ;;  %v1052_v43 = vpop.f32.mrf.mxu3 }
 0x163   :  { %1261 = vst [vmem:[%s2814_s4 + $0x2c0] sm:$0xff] %v783_v42 }
 0x164   :  { %1262 = vst.msk [vmem:[%s2814_s4 + $0x2c8] sm:$0xff] %vm1173_vm1, %v1052_v43  ;;  %v326_v43 = vld [vmem:[%s2813_s3 + $0xe8] sm:$0xff] }
 0x165   :  { %v660_v45 = vpop.f32.mrf.mxu0  ;;  %v929_v46 = vpop.f32.mrf.mxu1 }
 0x166   :  { %1179 = vst [vmem:[%s2814_s4 + $0x30] sm:$0xff] %v660_v45 }
 0x167   :  { %1406 = vmatmul.msk.f32.gmra.mxu2 %vm381_vm0, %v358_v44  ;;  %1490 = vmatmul.msk.f32.gmra.mxu3 %vm381_vm0, %v358_v44  ;;  %1180 = vst.msk [vmem:[%s2814_s4 + $0x38] sm:$0xff] %vm1173_vm1, %v929_v46  ;;  %v369_v46 = vld [vmem:[%s2813_s3 + $0x240] sm:$0xff] }
 0x168   :  { %1364 = vmatmul.msk.f32.gmra.mxu0 %vm381_vm0, %v316_v47  ;;  %1448 = vmatmul.msk.f32.gmra.mxu1 %vm381_vm0, %v316_v47 }
 0x16a   :  { %v786_v38 = vpop.f32.mrf.mxu2  ;;  %v1055_v48 = vpop.f32.mrf.mxu3 }
 0x16b   :  { %1263 = vst [vmem:[%s2814_s4 + $0x2d0] sm:$0xff] %v786_v38 }
 0x16c   :  { %1264 = vst.msk [vmem:[%s2814_s4 + $0x2d8] sm:$0xff] %vm1173_vm1, %v1055_v48  ;;  %v327_v48 = vld [vmem:[%s2813_s3 + $0xf0] sm:$0xff] }
 0x16d   :  { %v663_v50 = vpop.f32.mrf.mxu0  ;;  %v932_v51 = vpop.f32.mrf.mxu1 }
 0x16e   :  { %1181 = vst [vmem:[%s2814_s4 + $0x40] sm:$0xff] %v663_v50 }
 0x16f   :  { %1407 = vmatmul.msk.f32.gmra.mxu2 %vm381_vm0, %v359_v49  ;;  %1491 = vmatmul.msk.f32.gmra.mxu3 %vm381_vm0, %v359_v49  ;;  %1182 = vst.msk [vmem:[%s2814_s4 + $0x48] sm:$0xff] %vm1173_vm1, %v932_v51  ;;  %v370_v51 = vld [vmem:[%s2813_s3 + $0x248] sm:$0xff] }
 0x170   :  { %1365 = vmatmul.msk.f32.gmra.mxu0 %vm381_vm0, %v317_v52  ;;  %1449 = vmatmul.msk.f32.gmra.mxu1 %vm381_vm0, %v317_v52 }
 0x172   :  { %v789_v53 = vpop.f32.mrf.mxu2  ;;  %v1058_v54 = vpop.f32.mrf.mxu3 }
 0x173   :  { %1265 = vst [vmem:[%s2814_s4 + $0x2e0] sm:$0xff] %v789_v53 }
 0x174   :  { %1266 = vst.msk [vmem:[%s2814_s4 + $0x2e8] sm:$0xff] %vm1173_vm1, %v1058_v54  ;;  %v328_v54 = vld [vmem:[%s2813_s3 + $0xf8] sm:$0xff] }
 0x175   :  { %v666_v56 = vpop.f32.mrf.mxu0  ;;  %v935_v57 = vpop.f32.mrf.mxu1 }
 0x176   :  { %1183 = vst [vmem:[%s2814_s4 + $0x50] sm:$0xff] %v666_v56 }
 0x177   :  { %1408 = vmatmul.msk.f32.gmra.mxu2 %vm381_vm0, %v360_v55  ;;  %1492 = vmatmul.msk.f32.gmra.mxu3 %vm381_vm0, %v360_v55  ;;  %1184 = vst.msk [vmem:[%s2814_s4 + $0x58] sm:$0xff] %vm1173_vm1, %v935_v57  ;;  %v371_v57 = vld [vmem:[%s2813_s3 + $0x250] sm:$0xff] }
 0x178   :  { %1366 = vmatmul.msk.f32.gmra.mxu0 %vm381_vm0, %v318_v21  ;;  %1450 = vmatmul.msk.f32.gmra.mxu1 %vm381_vm0, %v318_v21 }
 0x17a   :  { %v792_v58 = vpop.f32.mrf.mxu2  ;;  %v1061_v59 = vpop.f32.mrf.mxu3 }
 0x17b   :  { %1267 = vst [vmem:[%s2814_s4 + $0x2f0] sm:$0xff] %v792_v58 }
 0x17c   :  { %1268 = vst.msk [vmem:[%s2814_s4 + $0x2f8] sm:$0xff] %vm1173_vm1, %v1061_v59  ;;  %v329_v59 = vld [vmem:[%s2813_s3 + $0x100] sm:$0xff] }
 0x17d   :  { %v669_v61 = vpop.f32.mrf.mxu0  ;;  %v938_v62 = vpop.f32.mrf.mxu1 }
 0x17e   :  { %1185 = vst [vmem:[%s2814_s4 + $0x60] sm:$0xff] %v669_v61 }
 0x17f   :  { %1409 = vmatmul.msk.f32.gmra.mxu2 %vm381_vm0, %v361_v60  ;;  %1493 = vmatmul.msk.f32.gmra.mxu3 %vm381_vm0, %v361_v60  ;;  %1186 = vst.msk [vmem:[%s2814_s4 + $0x68] sm:$0xff] %vm1173_vm1, %v938_v62  ;;  %v372_v62 = vld [vmem:[%s2813_s3 + $0x258] sm:$0xff] }
 0x180   :  { %1367 = vmatmul.msk.f32.gmra.mxu0 %vm381_vm0, %v319_v63  ;;  %1451 = vmatmul.msk.f32.gmra.mxu1 %vm381_vm0, %v319_v63 }
 0x182   :  { %v795_v0 = vpop.f32.mrf.mxu2  ;;  %v1064_v1 = vpop.f32.mrf.mxu3 }
 0x183   :  { %1269 = vst [vmem:[%s2814_s4 + $0x300] sm:$0xff] %v795_v0 }
 0x184   :  { %1270 = vst.msk [vmem:[%s2814_s4 + $0x308] sm:$0xff] %vm1173_vm1, %v1064_v1  ;;  %v330_v1 = vld [vmem:[%s2813_s3 + $0x108] sm:$0xff] }
 0x185   :  { %v672_v3 = vpop.f32.mrf.mxu0  ;;  %v941_v4 = vpop.f32.mrf.mxu1 }
 0x186   :  { %1187 = vst [vmem:[%s2814_s4 + $0x70] sm:$0xff] %v672_v3 }
 0x187   :  { %1410 = vmatmul.msk.f32.gmra.mxu2 %vm381_vm0, %v362_v2  ;;  %1494 = vmatmul.msk.f32.gmra.mxu3 %vm381_vm0, %v362_v2  ;;  %1188 = vst.msk [vmem:[%s2814_s4 + $0x78] sm:$0xff] %vm1173_vm1, %v941_v4  ;;  %v373_v4 = vld [vmem:[%s2813_s3 + $0x260] sm:$0xff] }
 0x188   :  { %1368 = vmatmul.msk.f32.gmra.mxu0 %vm381_vm0, %v320_v5  ;;  %1452 = vmatmul.msk.f32.gmra.mxu1 %vm381_vm0, %v320_v5 }
 0x18a   :  { %v798_v6 = vpop.f32.mrf.mxu2  ;;  %v1067_v7 = vpop.f32.mrf.mxu3 }
 0x18b   :  { %1271 = vst [vmem:[%s2814_s4 + $0x310] sm:$0xff] %v798_v6 }
 0x18c   :  { %1272 = vst.msk [vmem:[%s2814_s4 + $0x318] sm:$0xff] %vm1173_vm1, %v1067_v7  ;;  %v331_v7 = vld [vmem:[%s2813_s3 + $0x110] sm:$0xff] }
 0x18d   :  { %v675_v9 = vpop.f32.mrf.mxu0  ;;  %v944_v10 = vpop.f32.mrf.mxu1 }
 0x18e   :  { %1189 = vst [vmem:[%s2814_s4 + $0x80] sm:$0xff] %v675_v9 }
 0x18f   :  { %1411 = vmatmul.msk.f32.gmra.mxu2 %vm381_vm0, %v363_v8  ;;  %1495 = vmatmul.msk.f32.gmra.mxu3 %vm381_vm0, %v363_v8  ;;  %1190 = vst.msk [vmem:[%s2814_s4 + $0x88] sm:$0xff] %vm1173_vm1, %v944_v10  ;;  %v374_v10 = vld [vmem:[%s2813_s3 + $0x268] sm:$0xff] }
 0x190   :  { %1369 = vmatmul.msk.f32.gmra.mxu0 %vm381_vm0, %v321_v11  ;;  %1453 = vmatmul.msk.f32.gmra.mxu1 %vm381_vm0, %v321_v11 }
 0x192   :  { %v801_v12 = vpop.f32.mrf.mxu2  ;;  %v1070_v13 = vpop.f32.mrf.mxu3 }
 0x193   :  { %1273 = vst [vmem:[%s2814_s4 + $0x320] sm:$0xff] %v801_v12 }
 0x194   :  { %1274 = vst.msk [vmem:[%s2814_s4 + $0x328] sm:$0xff] %vm1173_vm1, %v1070_v13  ;;  %v332_v13 = vld [vmem:[%s2813_s3 + $0x118] sm:$0xff] }
 0x195   :  { %v678_v15 = vpop.f32.mrf.mxu0  ;;  %v947_v16 = vpop.f32.mrf.mxu1 }
 0x196   :  { %1191 = vst [vmem:[%s2814_s4 + $0x90] sm:$0xff] %v678_v15 }
 0x197   :  { %1412 = vmatmul.msk.f32.gmra.mxu2 %vm381_vm0, %v364_v14  ;;  %1496 = vmatmul.msk.f32.gmra.mxu3 %vm381_vm0, %v364_v14  ;;  %1192 = vst.msk [vmem:[%s2814_s4 + $0x98] sm:$0xff] %vm1173_vm1, %v947_v16  ;;  %v375_v16 = vld [vmem:[%s2813_s3 + $0x270] sm:$0xff] }
 0x198   :  { %1370 = vmatmul.msk.f32.gmra.mxu0 %vm381_vm0, %v322_v17  ;;  %1454 = vmatmul.msk.f32.gmra.mxu1 %vm381_vm0, %v322_v17 }
 0x19a   :  { %v804_v18 = vpop.f32.mrf.mxu2  ;;  %v1073_v19 = vpop.f32.mrf.mxu3 }
 0x19b   :  { %1275 = vst [vmem:[%s2814_s4 + $0x330] sm:$0xff] %v804_v18 }
 0x19c   :  { %1276 = vst.msk [vmem:[%s2814_s4 + $0x338] sm:$0xff] %vm1173_vm1, %v1073_v19  ;;  %v333_v19 = vld [vmem:[%s2813_s3 + $0x120] sm:$0xff] }
 0x19d   :  { %v681_v22 = vpop.f32.mrf.mxu0  ;;  %v950_v23 = vpop.f32.mrf.mxu1 }
 0x19e   :  { %1193 = vst [vmem:[%s2814_s4 + $0xa0] sm:$0xff] %v681_v22 }
 0x19f   :  { %1413 = vmatmul.msk.f32.gmra.mxu2 %vm381_vm0, %v365_v20  ;;  %1497 = vmatmul.msk.f32.gmra.mxu3 %vm381_vm0, %v365_v20  ;;  %1194 = vst.msk [vmem:[%s2814_s4 + $0xa8] sm:$0xff] %vm1173_vm1, %v950_v23  ;;  %v376_v23 = vld [vmem:[%s2813_s3 + $0x278] sm:$0xff] }
 0x1a0   :  { %1371 = vmatmul.msk.f32.gmra.mxu0 %vm381_vm0, %v323_v24  ;;  %1455 = vmatmul.msk.f32.gmra.mxu1 %vm381_vm0, %v323_v24 }
 0x1a2   :  { %v807_v25 = vpop.f32.mrf.mxu2  ;;  %v1076_v26 = vpop.f32.mrf.mxu3 }
 0x1a3   :  { %1277 = vst [vmem:[%s2814_s4 + $0x340] sm:$0xff] %v807_v25 }
 0x1a4   :  { %1278 = vst.msk [vmem:[%s2814_s4 + $0x348] sm:$0xff] %vm1173_vm1, %v1076_v26  ;;  %v334_v26 = vld [vmem:[%s2813_s3 + $0x128] sm:$0xff] }
 0x1a5   :  { %v684_v28 = vpop.f32.mrf.mxu0  ;;  %v953_v29 = vpop.f32.mrf.mxu1 }
 0x1a6   :  { %1195 = vst [vmem:[%s2814_s4 + $0xb0] sm:$0xff] %v684_v28 }
 0x1a7   :  { %1414 = vmatmul.msk.f32.gmra.mxu2 %vm381_vm0, %v366_v27  ;;  %1498 = vmatmul.msk.f32.gmra.mxu3 %vm381_vm0, %v366_v27  ;;  %1196 = vst.msk [vmem:[%s2814_s4 + $0xb8] sm:$0xff] %vm1173_vm1, %v953_v29  ;;  %v377_v29 = vld [vmem:[%s2813_s3 + $0x280] sm:$0xff] }
 0x1a8   :  { %1372 = vmatmul.msk.f32.gmra.mxu0 %vm381_vm0, %v324_v30  ;;  %1456 = vmatmul.msk.f32.gmra.mxu1 %vm381_vm0, %v324_v30 }
 0x1aa   :  { %v810_v31 = vpop.f32.mrf.mxu2  ;;  %v1079_v32 = vpop.f32.mrf.mxu3 }
 0x1ab   :  { %1279 = vst [vmem:[%s2814_s4 + $0x350] sm:$0xff] %v810_v31 }
 0x1ac   :  { %1280 = vst.msk [vmem:[%s2814_s4 + $0x358] sm:$0xff] %vm1173_vm1, %v1079_v32  ;;  %v335_v32 = vld [vmem:[%s2813_s3 + $0x130] sm:$0xff] }
 0x1ad   :  { %v687_v34 = vpop.f32.mrf.mxu0  ;;  %v956_v35 = vpop.f32.mrf.mxu1 }
 0x1ae   :  { %1197 = vst [vmem:[%s2814_s4 + $0xc0] sm:$0xff] %v687_v34 }
 0x1af   :  { %1415 = vmatmul.msk.f32.gmra.mxu2 %vm381_vm0, %v367_v33  ;;  %1499 = vmatmul.msk.f32.gmra.mxu3 %vm381_vm0, %v367_v33  ;;  %1198 = vst.msk [vmem:[%s2814_s4 + $0xc8] sm:$0xff] %vm1173_vm1, %v956_v35  ;;  %v378_v35 = vld [vmem:[%s2813_s3 + $0x288] sm:$0xff] }
 0x1b0   :  { %1373 = vmatmul.msk.f32.gmra.mxu0 %vm381_vm0, %v325_v36  ;;  %1457 = vmatmul.msk.f32.gmra.mxu1 %vm381_vm0, %v325_v36 }
 0x1b2   :  { %v813_v37 = vpop.f32.mrf.mxu2  ;;  %v1082_v39 = vpop.f32.mrf.mxu3 }
 0x1b3   :  { %1281 = vst [vmem:[%s2814_s4 + $0x360] sm:$0xff] %v813_v37 }
 0x1b4   :  { %1282 = vst.msk [vmem:[%s2814_s4 + $0x368] sm:$0xff] %vm1173_vm1, %v1082_v39  ;;  %v336_v39 = vld [vmem:[%s2813_s3 + $0x138] sm:$0xff] }
 0x1b5   :  { %v690_v41 = vpop.f32.mrf.mxu0  ;;  %v959_v42 = vpop.f32.mrf.mxu1 }
 0x1b6   :  { %1199 = vst [vmem:[%s2814_s4 + $0xd0] sm:$0xff] %v690_v41 }
 0x1b7   :  { %1416 = vmatmul.msk.f32.gmra.mxu2 %vm381_vm0, %v368_v40  ;;  %1500 = vmatmul.msk.f32.gmra.mxu3 %vm381_vm0, %v368_v40  ;;  %1200 = vst.msk [vmem:[%s2814_s4 + $0xd8] sm:$0xff] %vm1173_vm1, %v959_v42  ;;  %v379_v42 = vld [vmem:[%s2813_s3 + $0x290] sm:$0xff] }
 0x1b8   :  { %1374 = vmatmul.msk.f32.gmra.mxu0 %vm381_vm0, %v326_v43  ;;  %1458 = vmatmul.msk.f32.gmra.mxu1 %vm381_vm0, %v326_v43 }
 0x1ba   :  { %v816_v44 = vpop.f32.mrf.mxu2  ;;  %v1085_v45 = vpop.f32.mrf.mxu3 }
 0x1bb   :  { %1283 = vst [vmem:[%s2814_s4 + $0x370] sm:$0xff] %v816_v44 }
 0x1bc   :  { %1284 = vst.msk [vmem:[%s2814_s4 + $0x378] sm:$0xff] %vm1173_vm1, %v1085_v45  ;;  %v337_v45 = vld [vmem:[%s2813_s3 + $0x140] sm:$0xff] }
 0x1bd   :  { %v693_v47 = vpop.f32.mrf.mxu0  ;;  %v962_v38 = vpop.f32.mrf.mxu1 }
 0x1be   :  { %1201 = vst [vmem:[%s2814_s4 + $0xe0] sm:$0xff] %v693_v47 }
 0x1bf   :  { %1417 = vmatmul.msk.f32.gmra.mxu2 %vm381_vm0, %v369_v46  ;;  %1501 = vmatmul.msk.f32.gmra.mxu3 %vm381_vm0, %v369_v46  ;;  %1202 = vst.msk [vmem:[%s2814_s4 + $0xe8] sm:$0xff] %vm1173_vm1, %v962_v38  ;;  %v380_v38 = vld [vmem:[%s2813_s3 + $0x298] sm:$0xff] }
 0x1c0   :  { %1375 = vmatmul.msk.f32.gmra.mxu0 %vm381_vm0, %v327_v48  ;;  %1459 = vmatmul.msk.f32.gmra.mxu1 %vm381_vm0, %v327_v48 }
 0x1c2   :  { %v819_v49 = vpop.f32.mrf.mxu2  ;;  %v1088_v50 = vpop.f32.mrf.mxu3 }
 0x1c3   :  { %1285 = vst [vmem:[%s2814_s4 + $0x380] sm:$0xff] %v819_v49 }
 0x1c4   :  { %1286 = vst.msk [vmem:[%s2814_s4 + $0x388] sm:$0xff] %vm1173_vm1, %v1088_v50  ;;  %v338_v50 = vld [vmem:[%s2813_s3 + $0x148] sm:$0xff] }
 0x1c5   :  { %v696_v52 = vpop.f32.mrf.mxu0  ;;  %v965_v53 = vpop.f32.mrf.mxu1 }
 0x1c6   :  { %1203 = vst [vmem:[%s2814_s4 + $0xf0] sm:$0xff] %v696_v52 }
 0x1c7   :  { %1418 = vmatmul.msk.f32.gmra.mxu2 %vm381_vm0, %v370_v51  ;;  %1502 = vmatmul.msk.f32.gmra.mxu3 %vm381_vm0, %v370_v51  ;;  %1204 = vst.msk [vmem:[%s2814_s4 + $0xf8] sm:$0xff] %vm1173_vm1, %v965_v53 }
 0x1c8   :  { %1376 = vmatmul.msk.f32.gmra.mxu0 %vm381_vm0, %v328_v54  ;;  %1460 = vmatmul.msk.f32.gmra.mxu1 %vm381_vm0, %v328_v54 }
 0x1ca   :  { %v822_v55 = vpop.f32.mrf.mxu2  ;;  %v1091_v56 = vpop.f32.mrf.mxu3 }
 0x1cb   :  { %1287 = vst [vmem:[%s2814_s4 + $0x390] sm:$0xff] %v822_v55 }
 0x1cc   :  { %1288 = vst.msk [vmem:[%s2814_s4 + $0x398] sm:$0xff] %vm1173_vm1, %v1091_v56 }
 0x1cd   :  { %v699_v21 = vpop.f32.mrf.mxu0  ;;  %v968_v58 = vpop.f32.mrf.mxu1 }
 0x1ce   :  { %1205 = vst [vmem:[%s2814_s4 + $0x100] sm:$0xff] %v699_v21 }
 0x1cf   :  { %1419 = vmatmul.msk.f32.gmra.mxu2 %vm381_vm0, %v371_v57  ;;  %1503 = vmatmul.msk.f32.gmra.mxu3 %vm381_vm0, %v371_v57  ;;  %1206 = vst.msk [vmem:[%s2814_s4 + $0x108] sm:$0xff] %vm1173_vm1, %v968_v58 }
 0x1d0   :  { %1377 = vmatmul.msk.f32.gmra.mxu0 %vm381_vm0, %v329_v59  ;;  %1461 = vmatmul.msk.f32.gmra.mxu1 %vm381_vm0, %v329_v59 }
 0x1d2   :  { %v825_v60 = vpop.f32.mrf.mxu2  ;;  %v1094_v61 = vpop.f32.mrf.mxu3 }
 0x1d3   :  { %1289 = vst [vmem:[%s2814_s4 + $0x3a0] sm:$0xff] %v825_v60 }
 0x1d4   :  { %1290 = vst.msk [vmem:[%s2814_s4 + $0x3a8] sm:$0xff] %vm1173_vm1, %v1094_v61 }
 0x1d5   :  { %v702_v63 = vpop.f32.mrf.mxu0  ;;  %v971_v0 = vpop.f32.mrf.mxu1 }
 0x1d6   :  { %1207 = vst [vmem:[%s2814_s4 + $0x110] sm:$0xff] %v702_v63 }
 0x1d7   :  { %1420 = vmatmul.msk.f32.gmra.mxu2 %vm381_vm0, %v372_v62  ;;  %1504 = vmatmul.msk.f32.gmra.mxu3 %vm381_vm0, %v372_v62  ;;  %1208 = vst.msk [vmem:[%s2814_s4 + $0x118] sm:$0xff] %vm1173_vm1, %v971_v0 }
 0x1d8   :  { %1378 = vmatmul.msk.f32.gmra.mxu0 %vm381_vm0, %v330_v1  ;;  %1462 = vmatmul.msk.f32.gmra.mxu1 %vm381_vm0, %v330_v1 }
 0x1da   :  { %v828_v2 = vpop.f32.mrf.mxu2  ;;  %v1097_v3 = vpop.f32.mrf.mxu3 }
 0x1db   :  { %1291 = vst [vmem:[%s2814_s4 + $0x3b0] sm:$0xff] %v828_v2 }
 0x1dc   :  { %1292 = vst.msk [vmem:[%s2814_s4 + $0x3b8] sm:$0xff] %vm1173_vm1, %v1097_v3 }
 0x1dd   :  { %v705_v5 = vpop.f32.mrf.mxu0  ;;  %v974_v6 = vpop.f32.mrf.mxu1 }
 0x1de   :  { %1209 = vst [vmem:[%s2814_s4 + $0x120] sm:$0xff] %v705_v5 }
 0x1df   :  { %1421 = vmatmul.msk.f32.gmra.mxu2 %vm381_vm0, %v373_v4  ;;  %1505 = vmatmul.msk.f32.gmra.mxu3 %vm381_vm0, %v373_v4  ;;  %1210 = vst.msk [vmem:[%s2814_s4 + $0x128] sm:$0xff] %vm1173_vm1, %v974_v6 }
 0x1e0   :  { %1379 = vmatmul.msk.f32.gmra.mxu0 %vm381_vm0, %v331_v7  ;;  %1463 = vmatmul.msk.f32.gmra.mxu1 %vm381_vm0, %v331_v7 }
 0x1e2   :  { %v831_v8 = vpop.f32.mrf.mxu2  ;;  %v1100_v9 = vpop.f32.mrf.mxu3 }
 0x1e3   :  { %1293 = vst [vmem:[%s2814_s4 + $0x3c0] sm:$0xff] %v831_v8 }
 0x1e4   :  { %1294 = vst.msk [vmem:[%s2814_s4 + $0x3c8] sm:$0xff] %vm1173_vm1, %v1100_v9 }
 0x1e5   :  { %v708_v11 = vpop.f32.mrf.mxu0  ;;  %v977_v12 = vpop.f32.mrf.mxu1 }
 0x1e6   :  { %1211 = vst [vmem:[%s2814_s4 + $0x130] sm:$0xff] %v708_v11 }
 0x1e7   :  { %1422 = vmatmul.msk.f32.gmra.mxu2 %vm381_vm0, %v374_v10  ;;  %1506 = vmatmul.msk.f32.gmra.mxu3 %vm381_vm0, %v374_v10  ;;  %1212 = vst.msk [vmem:[%s2814_s4 + $0x138] sm:$0xff] %vm1173_vm1, %v977_v12 }
 0x1e8   :  { %1380 = vmatmul.msk.f32.gmra.mxu0 %vm381_vm0, %v332_v13  ;;  %1464 = vmatmul.msk.f32.gmra.mxu1 %vm381_vm0, %v332_v13 }
 0x1ea   :  { %v834_v14 = vpop.f32.mrf.mxu2  ;;  %v1103_v15 = vpop.f32.mrf.mxu3 }
 0x1eb   :  { %1295 = vst [vmem:[%s2814_s4 + $0x3d0] sm:$0xff] %v834_v14 }
 0x1ec   :  { %1296 = vst.msk [vmem:[%s2814_s4 + $0x3d8] sm:$0xff] %vm1173_vm1, %v1103_v15 }
 0x1ed   :  { %v711_v17 = vpop.f32.mrf.mxu0  ;;  %v980_v18 = vpop.f32.mrf.mxu1 }
 0x1ee   :  { %1213 = vst [vmem:[%s2814_s4 + $0x140] sm:$0xff] %v711_v17 }
 0x1ef   :  { %1423 = vmatmul.msk.f32.gmra.mxu2 %vm381_vm0, %v375_v16  ;;  %1507 = vmatmul.msk.f32.gmra.mxu3 %vm381_vm0, %v375_v16  ;;  %1214 = vst.msk [vmem:[%s2814_s4 + $0x148] sm:$0xff] %vm1173_vm1, %v980_v18 }
 0x1f0   :  { %1381 = vmatmul.msk.f32.gmra.mxu0 %vm381_vm0, %v333_v19  ;;  %1465 = vmatmul.msk.f32.gmra.mxu1 %vm381_vm0, %v333_v19 }
 0x1f2   :  { %v837_v20 = vpop.f32.mrf.mxu2  ;;  %v1106_v22 = vpop.f32.mrf.mxu3 }
 0x1f3   :  { %1297 = vst [vmem:[%s2814_s4 + $0x3e0] sm:$0xff] %v837_v20 }
 0x1f4   :  { %1298 = vst.msk [vmem:[%s2814_s4 + $0x3e8] sm:$0xff] %vm1173_vm1, %v1106_v22 }
 0x1f5   :  { %v714_v24 = vpop.f32.mrf.mxu0  ;;  %v983_v25 = vpop.f32.mrf.mxu1 }
 0x1f6   :  { %1215 = vst [vmem:[%s2814_s4 + $0x150] sm:$0xff] %v714_v24 }
 0x1f7   :  { %1424 = vmatmul.msk.f32.gmra.mxu2 %vm381_vm0, %v376_v23  ;;  %1508 = vmatmul.msk.f32.gmra.mxu3 %vm381_vm0, %v376_v23  ;;  %1216 = vst.msk [vmem:[%s2814_s4 + $0x158] sm:$0xff] %vm1173_vm1, %v983_v25 }
 0x1f8   :  { %1382 = vmatmul.msk.f32.gmra.mxu0 %vm381_vm0, %v334_v26  ;;  %1466 = vmatmul.msk.f32.gmra.mxu1 %vm381_vm0, %v334_v26 }
 0x1fa   :  { %v840_v27 = vpop.f32.mrf.mxu2  ;;  %v1109_v28 = vpop.f32.mrf.mxu3 }
 0x1fb   :  { %1299 = vst [vmem:[%s2814_s4 + $0x3f0] sm:$0xff] %v840_v27 }
 0x1fc   :  { %1300 = vst.msk [vmem:[%s2814_s4 + $0x3f8] sm:$0xff] %vm1173_vm1, %v1109_v28 }
 0x1fd   :  { %v717_v30 = vpop.f32.mrf.mxu0  ;;  %v986_v31 = vpop.f32.mrf.mxu1 }
 0x1fe   :  { %1217 = vst [vmem:[%s2814_s4 + $0x160] sm:$0xff] %v717_v30 }
 0x1ff   :  { %1425 = vmatmul.msk.f32.gmra.mxu2 %vm381_vm0, %v377_v29  ;;  %1509 = vmatmul.msk.f32.gmra.mxu3 %vm381_vm0, %v377_v29  ;;  %1218 = vst.msk [vmem:[%s2814_s4 + $0x168] sm:$0xff] %vm1173_vm1, %v986_v31 }
 0x200   :  { %1383 = vmatmul.msk.f32.gmra.mxu0 %vm381_vm0, %v335_v32  ;;  %1467 = vmatmul.msk.f32.gmra.mxu1 %vm381_vm0, %v335_v32 }
 0x202   :  { %v843_v33 = vpop.f32.mrf.mxu2  ;;  %v1112_v34 = vpop.f32.mrf.mxu3 }
 0x203   :  { %1301 = vst [vmem:[%s2814_s4 + $0x400] sm:$0xff] %v843_v33 }
 0x204   :  { %1302 = vst.msk [vmem:[%s2814_s4 + $0x408] sm:$0xff] %vm1173_vm1, %v1112_v34 }
 0x205   :  { %v720_v36 = vpop.f32.mrf.mxu0  ;;  %v989_v37 = vpop.f32.mrf.mxu1 }
 0x206   :  { %1219 = vst [vmem:[%s2814_s4 + $0x170] sm:$0xff] %v720_v36 }
 0x207   :  { %1426 = vmatmul.msk.f32.gmra.mxu2 %vm381_vm0, %v378_v35  ;;  %1510 = vmatmul.msk.f32.gmra.mxu3 %vm381_vm0, %v378_v35  ;;  %1220 = vst.msk [vmem:[%s2814_s4 + $0x178] sm:$0xff] %vm1173_vm1, %v989_v37 }
 0x208   :  { %1384 = vmatmul.msk.f32.gmra.mxu0 %vm381_vm0, %v336_v39  ;;  %1468 = vmatmul.msk.f32.gmra.mxu1 %vm381_vm0, %v336_v39 }
 0x20a   :  { %v846_v40 = vpop.f32.mrf.mxu2  ;;  %v1115_v41 = vpop.f32.mrf.mxu3 }
 0x20b   :  { %1303 = vst [vmem:[%s2814_s4 + $0x410] sm:$0xff] %v846_v40 }
 0x20c   :  { %1304 = vst.msk [vmem:[%s2814_s4 + $0x418] sm:$0xff] %vm1173_vm1, %v1115_v41 }
 0x20d   :  { %v723_v43 = vpop.f32.mrf.mxu0  ;;  %v992_v44 = vpop.f32.mrf.mxu1 }
 0x20e   :  { %1221 = vst [vmem:[%s2814_s4 + $0x180] sm:$0xff] %v723_v43 }
 0x20f   :  { %1427 = vmatmul.msk.f32.gmra.mxu2 %vm381_vm0, %v379_v42  ;;  %1511 = vmatmul.msk.f32.gmra.mxu3 %vm381_vm0, %v379_v42  ;;  %1222 = vst.msk [vmem:[%s2814_s4 + $0x188] sm:$0xff] %vm1173_vm1, %v992_v44 }
 0x210   :  { %1385 = vmatmul.msk.f32.gmra.mxu0 %vm381_vm0, %v337_v45  ;;  %1469 = vmatmul.msk.f32.gmra.mxu1 %vm381_vm0, %v337_v45 }
 0x212   :  { %v849_v46 = vpop.f32.mrf.mxu2  ;;  %v1118_v47 = vpop.f32.mrf.mxu3 }
 0x213   :  { %1305 = vst [vmem:[%s2814_s4 + $0x420] sm:$0xff] %v849_v46 }
 0x214   :  { %1306 = vst.msk [vmem:[%s2814_s4 + $0x428] sm:$0xff] %vm1173_vm1, %v1118_v47 }
 0x215   :  { %v726_v48 = vpop.f32.mrf.mxu0  ;;  %v995_v49 = vpop.f32.mrf.mxu1 }
 0x216   :  { %1223 = vst [vmem:[%s2814_s4 + $0x190] sm:$0xff] %v726_v48 }
 0x217   :  { %1428 = vmatmul.msk.f32.gmra.mxu2 %vm381_vm0, %v380_v38  ;;  %1512 = vmatmul.msk.f32.gmra.mxu3 %vm381_vm0, %v380_v38  ;;  %1224 = vst.msk [vmem:[%s2814_s4 + $0x198] sm:$0xff] %vm1173_vm1, %v995_v49 }
 0x218   :  { %1386 = vmatmul.msk.f32.gmra.mxu0 %vm381_vm0, %v338_v50  ;;  %1470 = vmatmul.msk.f32.gmra.mxu1 %vm381_vm0, %v338_v50 }
 0x21a   :  { %v852_v51 = vpop.f32.mrf.mxu2  ;;  %v1121_v52 = vpop.f32.mrf.mxu3 }
 0x21b   :  { %1307 = vst [vmem:[%s2814_s4 + $0x430] sm:$0xff] %v852_v51 }
 0x21c   :  { %1308 = vst.msk [vmem:[%s2814_s4 + $0x438] sm:$0xff] %vm1173_vm1, %v1121_v52 }
 0x21d   :  { %v729_v53 = vpop.f32.mrf.mxu0  ;;  %v998_v54 = vpop.f32.mrf.mxu1 }
 0x21e   :  { %1225 = vst [vmem:[%s2814_s4 + $0x1a0] sm:$0xff] %v729_v53 }
 0x21f   :  { %1226 = vst.msk [vmem:[%s2814_s4 + $0x1a8] sm:$0xff] %vm1173_vm1, %v998_v54 }
 0x222   :  { %v855_v55 = vpop.f32.mrf.mxu2  ;;  %v1124_v56 = vpop.f32.mrf.mxu3 }
 0x223   :  { %1309 = vst [vmem:[%s2814_s4 + $0x440] sm:$0xff] %v855_v55 }
 0x224   :  { %1310 = vst.msk [vmem:[%s2814_s4 + $0x448] sm:$0xff] %vm1173_vm1, %v1124_v56 }
 0x225   :  { %v732_v57 = vpop.f32.mrf.mxu0  ;;  %v1001_v21 = vpop.f32.mrf.mxu1 }
 0x226   :  { %1227 = vst [vmem:[%s2814_s4 + $0x1b0] sm:$0xff] %v732_v57 }
 0x227   :  { %1228 = vst.msk [vmem:[%s2814_s4 + $0x1b8] sm:$0xff] %vm1173_vm1, %v1001_v21 }
 0x22a   :  { %v858_v58 = vpop.f32.mrf.mxu2  ;;  %v1127_v59 = vpop.f32.mrf.mxu3 }
 0x22b   :  { %1311 = vst [vmem:[%s2814_s4 + $0x450] sm:$0xff] %v858_v58 }
 0x22c   :  { %1312 = vst.msk [vmem:[%s2814_s4 + $0x458] sm:$0xff] %vm1173_vm1, %v1127_v59 }
 0x22d   :  { %v735_v60 = vpop.f32.mrf.mxu0  ;;  %v1004_v61 = vpop.f32.mrf.mxu1 }
 0x22e   :  { %1229 = vst [vmem:[%s2814_s4 + $0x1c0] sm:$0xff] %v735_v60 }
 0x22f   :  { %1230 = vst.msk [vmem:[%s2814_s4 + $0x1c8] sm:$0xff] %vm1173_vm1, %v1004_v61 }
 0x232   :  { %v861_v62 = vpop.f32.mrf.mxu2  ;;  %v1130_v63 = vpop.f32.mrf.mxu3 }
 0x233   :  { %1313 = vst [vmem:[%s2814_s4 + $0x460] sm:$0xff] %v861_v62 }
 0x234   :  { %1314 = vst.msk [vmem:[%s2814_s4 + $0x468] sm:$0xff] %vm1173_vm1, %v1130_v63 }
 0x235   :  { %v738_v0 = vpop.f32.mrf.mxu0  ;;  %v1007_v1 = vpop.f32.mrf.mxu1 }
 0x236   :  { %1231 = vst [vmem:[%s2814_s4 + $0x1d0] sm:$0xff] %v738_v0 }
 0x237   :  { %1232 = vst.msk [vmem:[%s2814_s4 + $0x1d8] sm:$0xff] %vm1173_vm1, %v1007_v1 }
 0x23a   :  { %v864_v2 = vpop.f32.mrf.mxu2  ;;  %v1133_v3 = vpop.f32.mrf.mxu3 }
 0x23b   :  { %1315 = vst [vmem:[%s2814_s4 + $0x470] sm:$0xff] %v864_v2 }
 0x23c   :  { %1316 = vst.msk [vmem:[%s2814_s4 + $0x478] sm:$0xff] %vm1173_vm1, %v1133_v3 }
 0x23d   :  { %v741_v4 = vpop.f32.mrf.mxu0  ;;  %v1010_v5 = vpop.f32.mrf.mxu1 }
 0x23e   :  { %1233 = vst [vmem:[%s2814_s4 + $0x1e0] sm:$0xff] %v741_v4 }
 0x23f   :  { %1234 = vst.msk [vmem:[%s2814_s4 + $0x1e8] sm:$0xff] %vm1173_vm1, %v1010_v5 }
 0x242   :  { %v867_v6 = vpop.f32.mrf.mxu2  ;;  %v1136_v7 = vpop.f32.mrf.mxu3 }
 0x243   :  { %1317 = vst [vmem:[%s2814_s4 + $0x480] sm:$0xff] %v867_v6 }
 0x244   :  { %1318 = vst.msk [vmem:[%s2814_s4 + $0x488] sm:$0xff] %vm1173_vm1, %v1136_v7 }
 0x245   :  { %v744_v8 = vpop.f32.mrf.mxu0  ;;  %v1013_v9 = vpop.f32.mrf.mxu1 }
 0x246   :  { %1235 = vst [vmem:[%s2814_s4 + $0x1f0] sm:$0xff] %v744_v8 }
 0x247   :  { %1236 = vst.msk [vmem:[%s2814_s4 + $0x1f8] sm:$0xff] %vm1173_vm1, %v1013_v9 }
 0x24a   :  { %v870_v10 = vpop.f32.mrf.mxu2  ;;  %v1139_v11 = vpop.f32.mrf.mxu3 }
 0x24b   :  { %1319 = vst [vmem:[%s2814_s4 + $0x490] sm:$0xff] %v870_v10 }
 0x24c   :  { %1320 = vst.msk [vmem:[%s2814_s4 + $0x498] sm:$0xff] %vm1173_vm1, %v1139_v11 }
 0x24d   :  { %v747_v12 = vpop.f32.mrf.mxu0  ;;  %v1016_v13 = vpop.f32.mrf.mxu1 }
 0x24e   :  { %1237 = vst [vmem:[%s2814_s4 + $0x200] sm:$0xff] %v747_v12 }
 0x24f   :  { %1238 = vst.msk [vmem:[%s2814_s4 + $0x208] sm:$0xff] %vm1173_vm1, %v1016_v13 }
 0x252   :  { %v873_v14 = vpop.f32.mrf.mxu2  ;;  %v1142_v15 = vpop.f32.mrf.mxu3 }
 0x253   :  { %1321 = vst [vmem:[%s2814_s4 + $0x4a0] sm:$0xff] %v873_v14 }
 0x254   :  { %1322 = vst.msk [vmem:[%s2814_s4 + $0x4a8] sm:$0xff] %vm1173_vm1, %v1142_v15 }
 0x255   :  { %v750_v16 = vpop.f32.mrf.mxu0  ;;  %v1019_v17 = vpop.f32.mrf.mxu1 }
 0x256   :  { %1239 = vst [vmem:[%s2814_s4 + $0x210] sm:$0xff] %v750_v16 }
 0x257   :  { %1240 = vst.msk [vmem:[%s2814_s4 + $0x218] sm:$0xff] %vm1173_vm1, %v1019_v17 }
 0x25a   :  { %v876_v18 = vpop.f32.mrf.mxu2  ;;  %v1145_v19 = vpop.f32.mrf.mxu3 }
 0x25b   :  { %1323 = vst [vmem:[%s2814_s4 + $0x4b0] sm:$0xff] %v876_v18 }
 0x25c   :  { %1324 = vst.msk [vmem:[%s2814_s4 + $0x4b8] sm:$0xff] %vm1173_vm1, %v1145_v19 }
 0x25d   :  { %v753_v20 = vpop.f32.mrf.mxu0  ;;  %v1022_v22 = vpop.f32.mrf.mxu1 }
 0x25e   :  { %1241 = vst [vmem:[%s2814_s4 + $0x220] sm:$0xff] %v753_v20 }
 0x25f   :  { %1242 = vst.msk [vmem:[%s2814_s4 + $0x228] sm:$0xff] %vm1173_vm1, %v1022_v22 }
 0x262   :  { %v879_v23 = vpop.f32.mrf.mxu2  ;;  %v1148_v24 = vpop.f32.mrf.mxu3 }
 0x263   :  { %1325 = vst [vmem:[%s2814_s4 + $0x4c0] sm:$0xff] %v879_v23 }
 0x264   :  { %1326 = vst.msk [vmem:[%s2814_s4 + $0x4c8] sm:$0xff] %vm1173_vm1, %v1148_v24 }
 0x265   :  { %v756_v25 = vpop.f32.mrf.mxu0  ;;  %v1025_v26 = vpop.f32.mrf.mxu1 }
 0x266   :  { %1243 = vst [vmem:[%s2814_s4 + $0x230] sm:$0xff] %v756_v25 }
 0x267   :  { %1244 = vst.msk [vmem:[%s2814_s4 + $0x238] sm:$0xff] %vm1173_vm1, %v1025_v26 }
 0x26a   :  { %v882_v27 = vpop.f32.mrf.mxu2  ;;  %v1151_v28 = vpop.f32.mrf.mxu3 }
 0x26b   :  { %1327 = vst [vmem:[%s2814_s4 + $0x4d0] sm:$0xff] %v882_v27 }
 0x26c   :  { %1328 = vst.msk [vmem:[%s2814_s4 + $0x4d8] sm:$0xff] %vm1173_vm1, %v1151_v28 }
 0x26d   :  { %v759_v29 = vpop.f32.mrf.mxu0  ;;  %v1028_v30 = vpop.f32.mrf.mxu1 }
 0x26e   :  { %1245 = vst [vmem:[%s2814_s4 + $0x240] sm:$0xff] %v759_v29 }
 0x26f   :  { %1246 = vst.msk [vmem:[%s2814_s4 + $0x248] sm:$0xff] %vm1173_vm1, %v1028_v30 }
 0x272   :  { %v885_v31 = vpop.f32.mrf.mxu2  ;;  %v1154_v32 = vpop.f32.mrf.mxu3 }
 0x273   :  { %1329 = vst [vmem:[%s2814_s4 + $0x4e0] sm:$0xff] %v885_v31 }
 0x274   :  { %1330 = vst.msk [vmem:[%s2814_s4 + $0x4e8] sm:$0xff] %vm1173_vm1, %v1154_v32 }
 0x275   :  { %v762_v33 = vpop.f32.mrf.mxu0  ;;  %v1031_v34 = vpop.f32.mrf.mxu1 }
 0x276   :  { %1247 = vst [vmem:[%s2814_s4 + $0x250] sm:$0xff] %v762_v33 }
 0x277   :  { %1248 = vst.msk [vmem:[%s2814_s4 + $0x258] sm:$0xff] %vm1173_vm1, %v1031_v34 }
 0x27a   :  { %v888_v35 = vpop.f32.mrf.mxu2  ;;  %v1157_v36 = vpop.f32.mrf.mxu3 }
 0x27b   :  { %1331 = vst [vmem:[%s2814_s4 + $0x4f0] sm:$0xff] %v888_v35 }
 0x27c   :  { %1332 = vst.msk [vmem:[%s2814_s4 + $0x4f8] sm:$0xff] %vm1173_vm1, %v1157_v36 }
 0x27d   :  { %v765_v37 = vpop.f32.mrf.mxu0  ;;  %v1034_v39 = vpop.f32.mrf.mxu1 }
 0x27e   :  { %1249 = vst [vmem:[%s2814_s4 + $0x260] sm:$0xff] %v765_v37 }
 0x27f   :  { %1250 = vst.msk [vmem:[%s2814_s4 + $0x268] sm:$0xff] %vm1173_vm1, %v1034_v39 }
 0x282   :  { %v891_v40 = vpop.f32.mrf.mxu2  ;;  %v1160_v41 = vpop.f32.mrf.mxu3 }
 0x283   :  { %1333 = vst [vmem:[%s2814_s4 + $0x500] sm:$0xff] %v891_v40 }
 0x284   :  { %1334 = vst.msk [vmem:[%s2814_s4 + $0x508] sm:$0xff] %vm1173_vm1, %v1160_v41 }
 0x285   :  { %v768_v42 = vpop.f32.mrf.mxu0  ;;  %v1037_v43 = vpop.f32.mrf.mxu1 }
 0x286   :  { %1251 = vst [vmem:[%s2814_s4 + $0x270] sm:$0xff] %v768_v42 }
 0x287   :  { %1252 = vst.msk [vmem:[%s2814_s4 + $0x278] sm:$0xff] %vm1173_vm1, %v1037_v43 }
 0x28a   :  { %v894_v44 = vpop.f32.mrf.mxu2  ;;  %v1163_v45 = vpop.f32.mrf.mxu3 }
 0x28b   :  { %1335 = vst [vmem:[%s2814_s4 + $0x510] sm:$0xff] %v894_v44 }
 0x28c   :  { %1336 = vst.msk [vmem:[%s2814_s4 + $0x518] sm:$0xff] %vm1173_vm1, %v1163_v45 }
 0x28d   :  { %v771_v46 = vpop.f32.mrf.mxu0  ;;  %v1040_v47 = vpop.f32.mrf.mxu1 }
 0x28e   :  { %1253 = vst [vmem:[%s2814_s4 + $0x280] sm:$0xff] %v771_v46 }
 0x28f   :  { %1254 = vst.msk [vmem:[%s2814_s4 + $0x288] sm:$0xff] %vm1173_vm1, %v1040_v47 }
 0x292   :  { %v897_v38 = vpop.f32.mrf.mxu2  ;;  %v1166_v48 = vpop.f32.mrf.mxu3 }
 0x293   :  { %1337 = vst [vmem:[%s2814_s4 + $0x520] sm:$0xff] %v897_v38 }
 0x294   :  { %1338 = vst.msk [vmem:[%s2814_s4 + $0x528] sm:$0xff] %vm1173_vm1, %v1166_v48 }
 0x295   :  { %v774_v49 = vpop.f32.mrf.mxu0  ;;  %v1043_v50 = vpop.f32.mrf.mxu1 }
 0x296   :  { %1255 = vst [vmem:[%s2814_s4 + $0x290] sm:$0xff] %v774_v49 }
 0x297   :  { %1256 = vst.msk [vmem:[%s2814_s4 + $0x298] sm:$0xff] %vm1173_vm1, %v1043_v50 }
 0x29a   :  { %v900_v51 = vpop.f32.mrf.mxu2  ;;  %v1169_v52 = vpop.f32.mrf.mxu3 }
 0x29b   :  { %1339 = vst [vmem:[%s2814_s4 + $0x530] sm:$0xff] %v900_v51 }
 0x29c   :  { %1340 = vst.msk [vmem:[%s2814_s4 + $0x538] sm:$0xff] %vm1173_vm1, %v1169_v52 }

</bundles_post_ra>
